<compile_context>
chip_gen: v6e
topology: v6e:2x2x1
jax: 0.10.0
libtpu: 0.0.40
codegen_flags: <defaults>
</compile_context>

<pallas_src>
import jax
import jax.numpy as jnp
from jax.experimental import pallas as pl
from jax.experimental.pallas import tpu as pltpu

LAYER_DIMS = [784, 512, 256, 128, 64, 128, 256, 512, 784]   # logical dims
PAD_DIMS   = [784, 512, 256, 128, 128, 128, 256, 512, 784]  # only code dim padded
MAX_TILE_B = 512                                            # batch tile cap (MXU M)


def _round_up(n, m):
    return (n + m - 1) // m * m


def dnn_ae_kernel(x_ref, *refs):
    # refs = (w1, b1, w2, b2, ..., w8, b8, out_ref)
    out_ref = refs[-1]
    param_refs = refs[:-1]
    n_layers = len(param_refs) // 2

    h = x_ref[...]                                    # (TILE_B, 784) bf16
    for i in range(n_layers):
        w = param_refs[2 * i][...]                    # bf16 (in_p, out_p), VMEM-resident
        b = param_refs[2 * i + 1][...]                # f32  (1, out_p)
        # bf16 operands, f32 accumulation on the MXU; bias-add in f32 on the VPU.
        z = jnp.dot(h, w, preferred_element_type=jnp.float32) + b
        if i == n_layers - 1:
            out_ref[...] = jax.nn.sigmoid(z).astype(out_ref.dtype)   # output: sigmoid
        elif i == 3:
            h = z.astype(jnp.bfloat16)                # code layer: no activation
        else:
            h = jnp.maximum(z, 0.0).astype(jnp.bfloat16)             # ReLU, carry bf16
    # TODO(synk): Adam optimizer / MSELoss / .to(device) in the PyTorch module are
    # training-time state, not part of the forward pass; not implemented here.


def prepare_params(params):
    """One-time prep (call OUTSIDE the jitted forward):
    zero-pad the 64-wide code dim to 128 and cast weights to bf16."""
    prepared = []
    for i in range(len(LAYER_DIMS) - 1):
        w, b = params[2 * i], params[2 * i + 1]       # w: (in, out), b: (1, out)
        in_p, out_p = PAD_DIMS[i], PAD_DIMS[i + 1]
        wp = jnp.zeros((in_p, out_p), jnp.float32).at[: w.shape[0], : w.shape[1]].set(w)
        bp = jnp.zeros((1, out_p), jnp.float32).at[:, : b.shape[1]].set(b)
        prepared.append(wp.astype(jnp.bfloat16))      # weights bf16
        prepared.append(bp)                           # bias stays f32
    return prepared


@jax.jit
def dnn_ae_forward(x, prepared_params):
    """x: (B, 784) float32.  prepared_params: output of prepare_params()."""
    B = x.shape[0]
    f_in, f_out = PAD_DIMS[0], PAD_DIMS[-1]           # 784, 784 (unpadded)

    tile_b = min(MAX_TILE_B, _round_up(max(B, 1), 8)) # adaptive batch tile
    B_pad = _round_up(max(B, 1), tile_b)

    x_in = x.astype(jnp.bfloat16)                     # halve input DMA
    if B_pad != B:
        x_in = jnp.pad(x_in, ((0, B_pad - B), (0, 0)))

    grid = (B_pad // tile_b,)
    x_spec = pl.BlockSpec((tile_b, f_in), lambda i: (i, 0))
    out_spec = pl.BlockSpec((tile_b, f_out), lambda i: (i, 0))

    # Constant index maps -> weights/biases DMA'd once and kept VMEM-resident.
    param_specs = []
    for li in range(len(LAYER_DIMS) - 1):
        in_p, out_p = PAD_DIMS[li], PAD_DIMS[li + 1]
        param_specs.append(pl.BlockSpec((in_p, out_p), lambda i: (0, 0)))
        param_specs.append(pl.BlockSpec((1, out_p), lambda i: (0, 0)))

    out = pl.pallas_call(
        dnn_ae_kernel,
        out_shape=jax.ShapeDtypeStruct((B_pad, f_out), jnp.float32),
        grid=grid,
        in_specs=[x_spec] + param_specs,
        out_specs=out_spec,
        compiler_params=pltpu.CompilerParams(
            dimension_semantics=("parallel",),        # megacore batch sharding on v7x
            vmem_limit_bytes=48 << 20,                # fits v5e/v6e/v7x
        ),
    )(x_in, *prepared_params)

    if B_pad != B:
        out = out[:B]
    return out


def init_params(key):
    """nn.Linear-style init (uniform +/- 1/sqrt(fan_in)); weights as (in, out)."""
    params = []
    for i in range(len(LAYER_DIMS) - 1):
        fan_in, fan_out = LAYER_DIMS[i], LAYER_DIMS[i + 1]
        key, kw, kb = jax.random.split(key, 3)
        bound = 1.0 / (fan_in ** 0.5)
        w = jax.random.uniform(kw, (fan_in, fan_out), jnp.float32, -bound, bound)
        b = jax.random.uniform(kb, (1, fan_out), jnp.float32, -bound, bound)
        params.extend([w, b])
    return params


def reference_forward(x, params, cast_bf16=False):
    """Pure-JAX reference of the PyTorch forward pass.

    cast_bf16=True mirrors the kernel's bf16-operand / f32-accumulation matmuls
    with bf16-carried activations.
    """
    h = x
    n_layers = len(params) // 2
    for i in range(n_layers):
        w, b = params[2 * i], params[2 * i + 1]
        if cast_bf16:
            z = jnp.dot(h.astype(jnp.bfloat16), w.astype(jnp.bfloat16),
                        preferred_element_type=jnp.float32) + b
        else:
            z = h @ w + b
        if i == n_layers - 1:
            h = jax.nn.sigmoid(z)
        elif i == 3:
            h = z.astype(jnp.bfloat16).astype(jnp.float32) if cast_bf16 else z
        else:
            h = jnp.maximum(z, 0.0)
            if cast_bf16:
                h = h.astype(jnp.bfloat16).astype(jnp.float32)
    return h


if __name__ == "__main__":
    key = jax.random.PRNGKey(0)
    key, kx = jax.random.split(key)
    B = 8
    x = jax.random.uniform(kx, (B, 784), jnp.float32)   # MNIST-like flattened input
    params = init_params(key)
    prepared = prepare_params(params)                    # one-time, outside jit

    out = jax.block_until_ready(dnn_ae_forward(x, prepared))
    assert out.shape == (B, 784)

    # Tight check vs a reference that mirrors the kernel's bf16 matmul pipeline ...
    ref_q = reference_forward(x, params, cast_bf16=True)
    assert jnp.allclose(out, ref_q, atol=2e-3, rtol=2e-3), "mismatch vs bf16 reference"
    # ... and a loose check vs the full-f32 PyTorch-semantics reference.
    ref_f = reference_forward(x, params, cast_bf16=False)
    assert jnp.allclose(out, ref_f, atol=5e-2), "mismatch vs f32 reference"

    print("KERNEL_OK")
</pallas_src>

<mosaic_0001>
module attributes {stable_mosaic.version = 11 : i64} {
  func.func @dnn_ae_kernel(%arg0: i32, %arg1: memref<8x784xbf16, #tpu.memory_space<vmem>>, %arg2: memref<784x512xbf16, #tpu.memory_space<vmem>>, %arg3: memref<1x512xf32, #tpu.memory_space<vmem>>, %arg4: memref<512x256xbf16, #tpu.memory_space<vmem>>, %arg5: memref<1x256xf32, #tpu.memory_space<vmem>>, %arg6: memref<256x128xbf16, #tpu.memory_space<vmem>>, %arg7: memref<1x128xf32, #tpu.memory_space<vmem>>, %arg8: memref<128x128xbf16, #tpu.memory_space<vmem>>, %arg9: memref<1x128xf32, #tpu.memory_space<vmem>>, %arg10: memref<128x128xbf16, #tpu.memory_space<vmem>>, %arg11: memref<1x128xf32, #tpu.memory_space<vmem>>, %arg12: memref<128x256xbf16, #tpu.memory_space<vmem>>, %arg13: memref<1x256xf32, #tpu.memory_space<vmem>>, %arg14: memref<256x512xbf16, #tpu.memory_space<vmem>>, %arg15: memref<1x512xf32, #tpu.memory_space<vmem>>, %arg16: memref<512x784xbf16, #tpu.memory_space<vmem>>, %arg17: memref<1x784xf32, #tpu.memory_space<vmem>>, %arg18: memref<8x784xf32, #tpu.memory_space<vmem>>) attributes {dimension_semantics = [#tpu.dimension_semantics<parallel>], iteration_bounds = array<i64: 1>, scalar_prefetch = 0 : i64, scratch_operands = 0 : i64, tpu.core_type = #tpu.core_type<tc>, window_params = [{transform_indices = @transform_0, window_bounds = array<i64: 8, 784>}, {pipeline_mode = #tpu.pipeline_mode<synchronous>, transform_indices = @transform_1, window_bounds = array<i64: 784, 512>}, {pipeline_mode = #tpu.pipeline_mode<synchronous>, transform_indices = @transform_2, window_bounds = array<i64: 1, 512>}, {pipeline_mode = #tpu.pipeline_mode<synchronous>, transform_indices = @transform_3, window_bounds = array<i64: 512, 256>}, {pipeline_mode = #tpu.pipeline_mode<synchronous>, transform_indices = @transform_4, window_bounds = array<i64: 1, 256>}, {pipeline_mode = #tpu.pipeline_mode<synchronous>, transform_indices = @transform_5, window_bounds = array<i64: 256, 128>}, {pipeline_mode = #tpu.pipeline_mode<synchronous>, transform_indices = @transform_6, window_bounds = array<i64: 1, 128>}, {pipeline_mode = #tpu.pipeline_mode<synchronous>, transform_indices = @transform_7, window_bounds = array<i64: 128, 128>}, {pipeline_mode = #tpu.pipeline_mode<synchronous>, transform_indices = @transform_8, window_bounds = array<i64: 1, 128>}, {pipeline_mode = #tpu.pipeline_mode<synchronous>, transform_indices = @transform_9, window_bounds = array<i64: 128, 128>}, {pipeline_mode = #tpu.pipeline_mode<synchronous>, transform_indices = @transform_10, window_bounds = array<i64: 1, 128>}, {pipeline_mode = #tpu.pipeline_mode<synchronous>, transform_indices = @transform_11, window_bounds = array<i64: 128, 256>}, {pipeline_mode = #tpu.pipeline_mode<synchronous>, transform_indices = @transform_12, window_bounds = array<i64: 1, 256>}, {pipeline_mode = #tpu.pipeline_mode<synchronous>, transform_indices = @transform_13, window_bounds = array<i64: 256, 512>}, {pipeline_mode = #tpu.pipeline_mode<synchronous>, transform_indices = @transform_14, window_bounds = array<i64: 1, 512>}, {pipeline_mode = #tpu.pipeline_mode<synchronous>, transform_indices = @transform_15, window_bounds = array<i64: 512, 784>}, {pipeline_mode = #tpu.pipeline_mode<synchronous>, transform_indices = @transform_16, window_bounds = array<i64: 1, 784>}, {transform_indices = @transform_17, window_bounds = array<i64: 8, 784>}]} {
    %c0 = arith.constant 0 : index
    %c0_0 = arith.constant 0 : index
    %0 = vector.load %arg1[%c0, %c0_0] : memref<8x784xbf16, #tpu.memory_space<vmem>>, vector<8x784xbf16>
    %c0_1 = arith.constant 0 : index
    %c0_2 = arith.constant 0 : index
    %1 = vector.load %arg2[%c0_1, %c0_2] : memref<784x512xbf16, #tpu.memory_space<vmem>>, vector<784x512xbf16>
    %c0_3 = arith.constant 0 : index
    %c0_4 = arith.constant 0 : index
    %2 = vector.load %arg3[%c0_3, %c0_4] : memref<1x512xf32, #tpu.memory_space<vmem>>, vector<1x512xf32>
    %cst = arith.constant dense<0.000000e+00> : vector<8x512xf32>
    %3 = tpu.matmul %0, %1, %cst {dimension_numbers = #tpu.dot_dimension_numbers<[1], [0], [0], [1], [0, 0, 1, 1], [], []>} : vector<8x784xbf16>, vector<784x512xbf16>, vector<8x512xf32> -> vector<8x512xf32>
    %4 = vector.broadcast %2 : vector<1x512xf32> to vector<8x512xf32>
    %5 = arith.addf %3, %4 : vector<8x512xf32>
    %cst_5 = arith.constant 0.000000e+00 : f32
    %6 = vector.broadcast %cst_5 : f32 to vector<8x512xf32>
    %7 = arith.maximumf %5, %6 : vector<8x512xf32>
    %8 = arith.truncf %7 : vector<8x512xf32> to vector<8x512xbf16>
    %c0_6 = arith.constant 0 : index
    %c0_7 = arith.constant 0 : index
    %9 = vector.load %arg4[%c0_6, %c0_7] : memref<512x256xbf16, #tpu.memory_space<vmem>>, vector<512x256xbf16>
    %c0_8 = arith.constant 0 : index
    %c0_9 = arith.constant 0 : index
    %10 = vector.load %arg5[%c0_8, %c0_9] : memref<1x256xf32, #tpu.memory_space<vmem>>, vector<1x256xf32>
    %cst_10 = arith.constant dense<0.000000e+00> : vector<8x256xf32>
    %11 = tpu.matmul %8, %9, %cst_10 {dimension_numbers = #tpu.dot_dimension_numbers<[1], [0], [0], [1], [0, 0, 1, 1], [], []>} : vector<8x512xbf16>, vector<512x256xbf16>, vector<8x256xf32> -> vector<8x256xf32>
    %12 = vector.broadcast %10 : vector<1x256xf32> to vector<8x256xf32>
    %13 = arith.addf %11, %12 : vector<8x256xf32>
    %cst_11 = arith.constant 0.000000e+00 : f32
    %14 = vector.broadcast %cst_11 : f32 to vector<8x256xf32>
    %15 = arith.maximumf %13, %14 : vector<8x256xf32>
    %16 = arith.truncf %15 : vector<8x256xf32> to vector<8x256xbf16>
    %c0_12 = arith.constant 0 : index
    %c0_13 = arith.constant 0 : index
    %17 = vector.load %arg6[%c0_12, %c0_13] : memref<256x128xbf16, #tpu.memory_space<vmem>>, vector<256x128xbf16>
    %c0_14 = arith.constant 0 : index
    %c0_15 = arith.constant 0 : index
    %18 = vector.load %arg7[%c0_14, %c0_15] : memref<1x128xf32, #tpu.memory_space<vmem>>, vector<1x128xf32>
    %cst_16 = arith.constant dense<0.000000e+00> : vector<8x128xf32>
    %19 = tpu.matmul %16, %17, %cst_16 {dimension_numbers = #tpu.dot_dimension_numbers<[1], [0], [0], [1], [0, 0, 1, 1], [], []>} : vector<8x256xbf16>, vector<256x128xbf16>, vector<8x128xf32> -> vector<8x128xf32>
    %20 = vector.broadcast %18 : vector<1x128xf32> to vector<8x128xf32>
    %21 = arith.addf %19, %20 : vector<8x128xf32>
    %cst_17 = arith.constant 0.000000e+00 : f32
    %22 = vector.broadcast %cst_17 : f32 to vector<8x128xf32>
    %23 = arith.maximumf %21, %22 : vector<8x128xf32>
    %24 = arith.truncf %23 : vector<8x128xf32> to vector<8x128xbf16>
    %c0_18 = arith.constant 0 : index
    %c0_19 = arith.constant 0 : index
    %25 = vector.load %arg8[%c0_18, %c0_19] : memref<128x128xbf16, #tpu.memory_space<vmem>>, vector<128x128xbf16>
    %c0_20 = arith.constant 0 : index
    %c0_21 = arith.constant 0 : index
    %26 = vector.load %arg9[%c0_20, %c0_21] : memref<1x128xf32, #tpu.memory_space<vmem>>, vector<1x128xf32>
    %cst_22 = arith.constant dense<0.000000e+00> : vector<8x128xf32>
    %27 = tpu.matmul %24, %25, %cst_22 {dimension_numbers = #tpu.dot_dimension_numbers<[1], [0], [0], [1], [0, 0, 1, 1], [], []>} : vector<8x128xbf16>, vector<128x128xbf16>, vector<8x128xf32> -> vector<8x128xf32>
    %28 = vector.broadcast %26 : vector<1x128xf32> to vector<8x128xf32>
    %29 = arith.addf %27, %28 : vector<8x128xf32>
    %30 = arith.truncf %29 : vector<8x128xf32> to vector<8x128xbf16>
    %c0_23 = arith.constant 0 : index
    %c0_24 = arith.constant 0 : index
    %31 = vector.load %arg10[%c0_23, %c0_24] : memref<128x128xbf16, #tpu.memory_space<vmem>>, vector<128x128xbf16>
    %c0_25 = arith.constant 0 : index
    %c0_26 = arith.constant 0 : index
    %32 = vector.load %arg11[%c0_25, %c0_26] : memref<1x128xf32, #tpu.memory_space<vmem>>, vector<1x128xf32>
    %cst_27 = arith.constant dense<0.000000e+00> : vector<8x128xf32>
    %33 = tpu.matmul %30, %31, %cst_27 {dimension_numbers = #tpu.dot_dimension_numbers<[1], [0], [0], [1], [0, 0, 1, 1], [], []>} : vector<8x128xbf16>, vector<128x128xbf16>, vector<8x128xf32> -> vector<8x128xf32>
    %34 = vector.broadcast %32 : vector<1x128xf32> to vector<8x128xf32>
    %35 = arith.addf %33, %34 : vector<8x128xf32>
    %cst_28 = arith.constant 0.000000e+00 : f32
    %36 = vector.broadcast %cst_28 : f32 to vector<8x128xf32>
    %37 = arith.maximumf %35, %36 : vector<8x128xf32>
    %38 = arith.truncf %37 : vector<8x128xf32> to vector<8x128xbf16>
    %c0_29 = arith.constant 0 : index
    %c0_30 = arith.constant 0 : index
    %39 = vector.load %arg12[%c0_29, %c0_30] : memref<128x256xbf16, #tpu.memory_space<vmem>>, vector<128x256xbf16>
    %c0_31 = arith.constant 0 : index
    %c0_32 = arith.constant 0 : index
    %40 = vector.load %arg13[%c0_31, %c0_32] : memref<1x256xf32, #tpu.memory_space<vmem>>, vector<1x256xf32>
    %cst_33 = arith.constant dense<0.000000e+00> : vector<8x256xf32>
    %41 = tpu.matmul %38, %39, %cst_33 {dimension_numbers = #tpu.dot_dimension_numbers<[1], [0], [0], [1], [0, 0, 1, 1], [], []>} : vector<8x128xbf16>, vector<128x256xbf16>, vector<8x256xf32> -> vector<8x256xf32>
    %42 = vector.broadcast %40 : vector<1x256xf32> to vector<8x256xf32>
    %43 = arith.addf %41, %42 : vector<8x256xf32>
    %cst_34 = arith.constant 0.000000e+00 : f32
    %44 = vector.broadcast %cst_34 : f32 to vector<8x256xf32>
    %45 = arith.maximumf %43, %44 : vector<8x256xf32>
    %46 = arith.truncf %45 : vector<8x256xf32> to vector<8x256xbf16>
    %c0_35 = arith.constant 0 : index
    %c0_36 = arith.constant 0 : index
    %47 = vector.load %arg14[%c0_35, %c0_36] : memref<256x512xbf16, #tpu.memory_space<vmem>>, vector<256x512xbf16>
    %c0_37 = arith.constant 0 : index
    %c0_38 = arith.constant 0 : index
    %48 = vector.load %arg15[%c0_37, %c0_38] : memref<1x512xf32, #tpu.memory_space<vmem>>, vector<1x512xf32>
    %cst_39 = arith.constant dense<0.000000e+00> : vector<8x512xf32>
    %49 = tpu.matmul %46, %47, %cst_39 {dimension_numbers = #tpu.dot_dimension_numbers<[1], [0], [0], [1], [0, 0, 1, 1], [], []>} : vector<8x256xbf16>, vector<256x512xbf16>, vector<8x512xf32> -> vector<8x512xf32>
    %50 = vector.broadcast %48 : vector<1x512xf32> to vector<8x512xf32>
    %51 = arith.addf %49, %50 : vector<8x512xf32>
    %cst_40 = arith.constant 0.000000e+00 : f32
    %52 = vector.broadcast %cst_40 : f32 to vector<8x512xf32>
    %53 = arith.maximumf %51, %52 : vector<8x512xf32>
    %54 = arith.truncf %53 : vector<8x512xf32> to vector<8x512xbf16>
    %c0_41 = arith.constant 0 : index
    %c0_42 = arith.constant 0 : index
    %55 = vector.load %arg16[%c0_41, %c0_42] : memref<512x784xbf16, #tpu.memory_space<vmem>>, vector<512x784xbf16>
    %c0_43 = arith.constant 0 : index
    %c0_44 = arith.constant 0 : index
    %56 = vector.load %arg17[%c0_43, %c0_44] : memref<1x784xf32, #tpu.memory_space<vmem>>, vector<1x784xf32>
    %cst_45 = arith.constant dense<0.000000e+00> : vector<8x784xf32>
    %57 = tpu.matmul %54, %55, %cst_45 {dimension_numbers = #tpu.dot_dimension_numbers<[1], [0], [0], [1], [0, 0, 1, 1], [], []>} : vector<8x512xbf16>, vector<512x784xbf16>, vector<8x784xf32> -> vector<8x784xf32>
    %58 = vector.broadcast %56 : vector<1x784xf32> to vector<8x784xf32>
    %59 = arith.addf %57, %58 : vector<8x784xf32>
    %60 = arith.negf %59 : vector<8x784xf32>
    %61 = math.exp %60 : vector<8x784xf32>
    %cst_46 = arith.constant 1.000000e+00 : f32
    %62 = vector.broadcast %cst_46 : f32 to vector<8x784xf32>
    %63 = arith.addf %62, %61 : vector<8x784xf32>
    %64 = arith.divf %62, %63 : vector<8x784xf32>
    %c0_47 = arith.constant 0 : index
    %c0_48 = arith.constant 0 : index
    %65 = vector.load %arg18[%c0_47, %c0_48] : memref<8x784xf32, #tpu.memory_space<vmem>>, vector<8x784xf32>
    tpu.vector_store %arg18[%c0_47, %c0_48], %64 {strides = array<i32>} : memref<8x784xf32, #tpu.memory_space<vmem>>, vector<8x784xf32>,
    return
  }
  func.func @transform_0(%arg0: i32) -> (i32, i32) {
    %c0_i32 = arith.constant 0 : i32
    %c0_i32_0 = arith.constant 0 : i32
    return %arg0, %c0_i32 : i32, i32
  }
  func.func @transform_1(%arg0: i32) -> (i32, i32) {
    %c0_i32 = arith.constant 0 : i32
    %c0_i32_0 = arith.constant 0 : i32
    %c0_i32_1 = arith.constant 0 : i32
    return %c0_i32, %c0_i32_0 : i32, i32
  }
  func.func @transform_2(%arg0: i32) -> (i32, i32) {
    %c0_i32 = arith.constant 0 : i32
    %c0_i32_0 = arith.constant 0 : i32
    %c0_i32_1 = arith.constant 0 : i32
    return %c0_i32, %c0_i32_0 : i32, i32
  }
  func.func @transform_3(%arg0: i32) -> (i32, i32) {
    %c0_i32 = arith.constant 0 : i32
    %c0_i32_0 = arith.constant 0 : i32
    %c0_i32_1 = arith.constant 0 : i32
    return %c0_i32, %c0_i32_0 : i32, i32
  }
  func.func @transform_4(%arg0: i32) -> (i32, i32) {
    %c0_i32 = arith.constant 0 : i32
    %c0_i32_0 = arith.constant 0 : i32
    %c0_i32_1 = arith.constant 0 : i32
    return %c0_i32, %c0_i32_0 : i32, i32
  }
  func.func @transform_5(%arg0: i32) -> (i32, i32) {
    %c0_i32 = arith.constant 0 : i32
    %c0_i32_0 = arith.constant 0 : i32
    %c0_i32_1 = arith.constant 0 : i32
    return %c0_i32, %c0_i32_0 : i32, i32
  }
  func.func @transform_6(%arg0: i32) -> (i32, i32) {
    %c0_i32 = arith.constant 0 : i32
    %c0_i32_0 = arith.constant 0 : i32
    %c0_i32_1 = arith.constant 0 : i32
    return %c0_i32, %c0_i32_0 : i32, i32
  }
  func.func @transform_7(%arg0: i32) -> (i32, i32) {
    %c0_i32 = arith.constant 0 : i32
    %c0_i32_0 = arith.constant 0 : i32
    %c0_i32_1 = arith.constant 0 : i32
    return %c0_i32, %c0_i32_0 : i32, i32
  }
  func.func @transform_8(%arg0: i32) -> (i32, i32) {
    %c0_i32 = arith.constant 0 : i32
    %c0_i32_0 = arith.constant 0 : i32
    %c0_i32_1 = arith.constant 0 : i32
    return %c0_i32, %c0_i32_0 : i32, i32
  }
  func.func @transform_9(%arg0: i32) -> (i32, i32) {
    %c0_i32 = arith.constant 0 : i32
    %c0_i32_0 = arith.constant 0 : i32
    %c0_i32_1 = arith.constant 0 : i32
    return %c0_i32, %c0_i32_0 : i32, i32
  }
  func.func @transform_10(%arg0: i32) -> (i32, i32) {
    %c0_i32 = arith.constant 0 : i32
    %c0_i32_0 = arith.constant 0 : i32
    %c0_i32_1 = arith.constant 0 : i32
    return %c0_i32, %c0_i32_0 : i32, i32
  }
  func.func @transform_11(%arg0: i32) -> (i32, i32) {
    %c0_i32 = arith.constant 0 : i32
    %c0_i32_0 = arith.constant 0 : i32
    %c0_i32_1 = arith.constant 0 : i32
    return %c0_i32, %c0_i32_0 : i32, i32
  }
  func.func @transform_12(%arg0: i32) -> (i32, i32) {
    %c0_i32 = arith.constant 0 : i32
    %c0_i32_0 = arith.constant 0 : i32
    %c0_i32_1 = arith.constant 0 : i32
    return %c0_i32, %c0_i32_0 : i32, i32
  }
  func.func @transform_13(%arg0: i32) -> (i32, i32) {
    %c0_i32 = arith.constant 0 : i32
    %c0_i32_0 = arith.constant 0 : i32
    %c0_i32_1 = arith.constant 0 : i32
    return %c0_i32, %c0_i32_0 : i32, i32
  }
  func.func @transform_14(%arg0: i32) -> (i32, i32) {
    %c0_i32 = arith.constant 0 : i32
    %c0_i32_0 = arith.constant 0 : i32
    %c0_i32_1 = arith.constant 0 : i32
    return %c0_i32, %c0_i32_0 : i32, i32
  }
  func.func @transform_15(%arg0: i32) -> (i32, i32) {
    %c0_i32 = arith.constant 0 : i32
    %c0_i32_0 = arith.constant 0 : i32
    %c0_i32_1 = arith.constant 0 : i32
    return %c0_i32, %c0_i32_0 : i32, i32
  }
  func.func @transform_16(%arg0: i32) -> (i32, i32) {
    %c0_i32 = arith.constant 0 : i32
    %c0_i32_0 = arith.constant 0 : i32
    %c0_i32_1 = arith.constant 0 : i32
    return %c0_i32, %c0_i32_0 : i32, i32
  }
  func.func @transform_17(%arg0: i32) -> (i32, i32) {
    %c0_i32 = arith.constant 0 : i32
    %c0_i32_0 = arith.constant 0 : i32
    return %arg0, %c0_i32 : i32, i32
  }
}

</mosaic_0001>

<bundles_post_ra>
// kernel: dnn_ae_forward.1
= control target key start
LH: loop header
LB: loop body
LE: loop exit
PB: predicated region body
PF: predicated region fallthrough
CT: control target
= control target key end

     0   :  { %s8698_s0 = inlined_call_operand.vmem [shape: bf16[8,784], index: 0, kind: input, shape index: {}]   ;;  %s8699_s1 = inlined_call_operand.vmem [shape: bf16[784,512], index: 1, kind: input, shape index: {}]   ;;  %s8700_s2 = inlined_call_operand.vmem [shape: f32[1,512], index: 2, kind: input, shape index: {}]   ;;  %s8701_s3 = inlined_call_operand.vmem [shape: bf16[512,256], index: 3, kind: input, shape index: {}]   ;;  %s8702_s4 = inlined_call_operand.vmem [shape: f32[1,256], index: 4, kind: input, shape index: {}]   ;;  %s8703_s5 = inlined_call_operand.vmem [shape: bf16[256,128], index: 5, kind: input, shape index: {}]   ;;  %s8704_s6 = inlined_call_operand.vmem [shape: f32[1,128], index: 6, kind: input, shape index: {}]   ;;  %s8705_s7 = inlined_call_operand.vmem [shape: bf16[128,128], index: 7, kind: input, shape index: {}]   ;;  %s8706_s8 = inlined_call_operand.vmem [shape: f32[1,128], index: 8, kind: input, shape index: {}]   ;;  %s8707_s9 = inlined_call_operand.vmem [shape: bf16[128,128], index: 9, kind: input, shape index: {}]   ;;  %s8708_s10 = inlined_call_operand.vmem [shape: f32[1,128], index: 10, kind: input, shape index: {}]   ;;  %s8709_s11 = inlined_call_operand.vmem [shape: bf16[128,256], index: 11, kind: input, shape index: {}]   ;;  %s8710_s12 = inlined_call_operand.vmem [shape: f32[1,256], index: 12, kind: input, shape index: {}]   ;;  %s8711_s13 = inlined_call_operand.vmem [shape: bf16[256,512], index: 13, kind: input, shape index: {}]   ;;  %s8712_s14 = inlined_call_operand.vmem [shape: f32[1,512], index: 14, kind: input, shape index: {}]   ;;  %s8713_s15 = inlined_call_operand.vmem [shape: bf16[512,784], index: 15, kind: input, shape index: {}]   ;;  %s8714_s16 = inlined_call_operand.vmem [shape: f32[1,784], index: 16, kind: input, shape index: {}]   ;;  %s8715_s17 = inlined_call_operand.hbm [shape: f32[8,784], index: 17, kind: output, shape index: {}]  }
   0x1   :  { %8718 = sst [smem:[#allocation5_spill]] %s8698_s0 }
   0x2   :  { %8719 = sst [smem:[#allocation6_spill]] %s8699_s1 }
   0x3   :  { %s8720_s26 = sld [smem:[#allocation6_spill]]  ;;  %vm1284_vm0 = vcmask 130048  }
   0x4   :  { %s8721_s20 = sld [smem:[#allocation5_spill]] }
   0x9   :  { %v5734_v0 = vld [vmem:[%s8720_s26 + $0xe4] ss:$16 sps:$4 sm:$0xff]   ;;  %v5738_v2 = vld [vmem:[%s8720_s26 + $0xe0] ss:$16 sps:$4 sm:$0xff]  }
   0xa   :  { %v5736_v1 = vld [vmem:[%s8720_s26 + $0x2e4] ss:$16 sps:$4 sm:$0xff]   ;;  %1288 = vmatprep.subr.bf16.mxu0 %v5734_v0  ;;  %v5739_v3 = vld [vmem:[%s8720_s26 + $0x2e0] ss:$16 sps:$4 sm:$0xff]   ;;  %v59_v48 = vld [vmem:[%s8721_s20 + $0x8] sm:$0xff] }
   0xb   :  { %1329 = vmatprep.subr.bf16.mxu1 %v5736_v1  ;;  %v5740_v4 = vld [vmem:[%s8720_s26 + $0xc4] ss:$16 sps:$4 sm:$0xff]   ;;  %1289 = vmatpush1.bf16.msra.mxu0 %v5738_v2  ;;  %v5744_v6 = vld [vmem:[%s8720_s26 + $0xc0] ss:$16 sps:$4 sm:$0xff]   ;;  %v6900_v51 = vcombine.high %v59_v48, %v59_v48 }
   0xc   :  { %1330 = vmatpush1.bf16.msra.mxu1 %v5739_v3  ;;  %v5742_v5 = vld [vmem:[%s8720_s26 + $0x2c4] ss:$16 sps:$4 sm:$0xff]   ;;  %1290 = vmatprep.subr.bf16.mxu0 %v5740_v4  ;;  %v5745_v7 = vld [vmem:[%s8720_s26 + $0x2c0] ss:$16 sps:$4 sm:$0xff]  }
   0xd   :  { %1331 = vmatprep.subr.bf16.mxu1 %v5742_v5  ;;  %v5746_v8 = vld [vmem:[%s8720_s26 + $0xa4] ss:$16 sps:$4 sm:$0xff]   ;;  %v5750_v10 = vld [vmem:[%s8720_s26 + $0xa0] ss:$16 sps:$4 sm:$0xff]   ;;  %1361 = vmatprep.mubr.bf16.mxu1 %v6900_v51 }
   0xe   :  { %v5748_v9 = vld [vmem:[%s8720_s26 + $0x2a4] ss:$16 sps:$4 sm:$0xff]   ;;  %v5751_v11 = vld [vmem:[%s8720_s26 + $0x2a0] ss:$16 sps:$4 sm:$0xff]  }
   0xf   :  { %1291 = vmatpush1.bf16.msra.mxu0 %v5744_v6  ;;  %v5752_v12 = vld [vmem:[%s8720_s26 + $0x84] ss:$16 sps:$4 sm:$0xff]   ;;  %v5756_v14 = vld [vmem:[%s8720_s26 + $0x80] ss:$16 sps:$4 sm:$0xff]  }
  0x10   :  { %1332 = vmatpush1.bf16.msra.mxu1 %v5745_v7  ;;  %1292 = vmatprep.subr.bf16.mxu0 %v5746_v8  ;;  %v5754_v13 = vld [vmem:[%s8720_s26 + $0x284] ss:$16 sps:$4 sm:$0xff]   ;;  %v5757_v15 = vld [vmem:[%s8720_s26 + $0x280] ss:$16 sps:$4 sm:$0xff]   ;;  %v6960_v7 = vcombine.low %v59_v48, %v59_v48  ;;  %v5894_v48 = vld [vmem:[%s8720_s26 + $0x1ec] ss:$16 sps:$4 sm:$0xff]  }
  0x11   :  { %1333 = vmatprep.subr.bf16.mxu1 %v5748_v9  ;;  %v5758_v16 = vld [vmem:[%s8720_s26 + $0x64] ss:$16 sps:$4 sm:$0xff]   ;;  %v5762_v18 = vld [vmem:[%s8720_s26 + $0x60] ss:$16 sps:$4 sm:$0xff]  }
  0x12   :  { %v5760_v17 = vld [vmem:[%s8720_s26 + $0x264] ss:$16 sps:$4 sm:$0xff]   ;;  %v5763_v19 = vld [vmem:[%s8720_s26 + $0x260] ss:$16 sps:$4 sm:$0xff]  }
  0x13   :  { %1293 = vmatpush1.bf16.msra.mxu0 %v5750_v10  ;;  %v5764_v20 = vld [vmem:[%s8720_s26 + $0x44] ss:$16 sps:$4 sm:$0xff]   ;;  %v5768_v22 = vld [vmem:[%s8720_s26 + $0x40] ss:$16 sps:$4 sm:$0xff]  }
  0x14   :  { %1334 = vmatpush1.bf16.msra.mxu1 %v5751_v11  ;;  %1294 = vmatprep.subr.bf16.mxu0 %v5752_v12  ;;  %v5766_v21 = vld [vmem:[%s8720_s26 + $0x244] ss:$16 sps:$4 sm:$0xff]   ;;  %v5769_v23 = vld [vmem:[%s8720_s26 + $0x240] ss:$16 sps:$4 sm:$0xff]   ;;  %v5845_v11 = vld [vmem:[%s8720_s26 + $0xec] ss:$16 sps:$4 sm:$0xff]  }
  0x15   :  { %1335 = vmatprep.subr.bf16.mxu1 %v5754_v13  ;;  %v5770_v24 = vld [vmem:[%s8720_s26 + $0x24] ss:$16 sps:$4 sm:$0xff]   ;;  %v5774_v26 = vld [vmem:[%s8720_s26 + $0x20] ss:$16 sps:$4 sm:$0xff]   ;;  %v6654_v13 = vmov 0  }
  0x16   :  { %v5772_v25 = vld [vmem:[%s8720_s26 + $0x224] ss:$16 sps:$4 sm:$0xff]   ;;  %v5775_v27 = vld [vmem:[%s8720_s26 + $0x220] ss:$16 sps:$4 sm:$0xff]  }
  0x17   :  { %1295 = vmatpush1.bf16.msra.mxu0 %v5756_v14  ;;  %v5776_v28 = vld [vmem:[%s8720_s26 + $0x4] ss:$16 sps:$4 sm:$0xff]   ;;  %v5780_v30 = vld [vmem:[%s8720_s26] ss:$16 sps:$4 sm:$0xff]  }
  0x18   :  { %1336 = vmatpush1.bf16.msra.mxu1 %v5757_v15  ;;  %1296 = vmatprep.subr.bf16.mxu0 %v5758_v16  ;;  %v5778_v29 = vld [vmem:[%s8720_s26 + $0x204] ss:$16 sps:$4 sm:$0xff]   ;;  %v5781_v31 = vld [vmem:[%s8720_s26 + $0x200] ss:$16 sps:$4 sm:$0xff]   ;;  %v5843_v15 = vld [vmem:[%s8720_s26 + $0xe8] ss:$16 sps:$4 sm:$0xff]  }
  0x19   :  { %1337 = vmatprep.subr.bf16.mxu1 %v5760_v17  ;;  %v5782_v32 = vld [vmem:[%s8720_s26 + $0x1e4] ss:$16 sps:$4 sm:$0xff]   ;;  %v5786_v34 = vld [vmem:[%s8720_s26 + $0x1e0] ss:$16 sps:$4 sm:$0xff]   ;;  %v5849_v17 = vld [vmem:[%s8721_s20 + $0x18] ss:$0 sps:$4 sm:$0xff]  }
  0x1a   :  { %v5784_v33 = vld [vmem:[%s8720_s26 + $0x3e4] ss:$16 sps:$4 sm:$0xff]   ;;  %v5787_v35 = vld [vmem:[%s8720_s26 + $0x3e0] ss:$16 sps:$4 sm:$0xff]  }
  0x1b   :  { %1297 = vmatpush1.bf16.msra.mxu0 %v5762_v18  ;;  %v5788_v36 = vld [vmem:[%s8720_s26 + $0x1c4] ss:$16 sps:$4 sm:$0xff]   ;;  %v5792_v38 = vld [vmem:[%s8720_s26 + $0x1c0] ss:$16 sps:$4 sm:$0xff]   ;;  %v5852_v18 = vld [vmem:[%s8720_s26 + $0xcc] ss:$16 sps:$4 sm:$0xff]  }
  0x1c   :  { %1338 = vmatpush1.bf16.msra.mxu1 %v5763_v19  ;;  %1298 = vmatprep.subr.bf16.mxu0 %v5764_v20  ;;  %v5790_v37 = vld [vmem:[%s8720_s26 + $0x3c4] ss:$16 sps:$4 sm:$0xff]   ;;  %v5793_v39 = vld [vmem:[%s8720_s26 + $0x3c0] ss:$16 sps:$4 sm:$0xff]   ;;  %v5850_v20 = vld [vmem:[%s8720_s26 + $0xc8] ss:$16 sps:$4 sm:$0xff]  }
  0x1d   :  { %1339 = vmatprep.subr.bf16.mxu1 %v5766_v21  ;;  %v5794_v40 = vld [vmem:[%s8720_s26 + $0x1a4] ss:$16 sps:$4 sm:$0xff]   ;;  %v5798_v42 = vld [vmem:[%s8720_s26 + $0x1a0] ss:$16 sps:$4 sm:$0xff]  }
  0x1e   :  { %v5796_v41 = vld [vmem:[%s8720_s26 + $0x3a4] ss:$16 sps:$4 sm:$0xff]   ;;  %v5799_v43 = vld [vmem:[%s8720_s26 + $0x3a0] ss:$16 sps:$4 sm:$0xff]  }
  0x1f   :  { %1299 = vmatpush1.bf16.msra.mxu0 %v5768_v22  ;;  %v5800_v44 = vld [vmem:[%s8720_s26 + $0x184] ss:$16 sps:$4 sm:$0xff]   ;;  %v5804_v49 = vld [vmem:[%s8720_s26 + $0x180] ss:$16 sps:$4 sm:$0xff]   ;;  %v5858_v22 = vld [vmem:[%s8720_s26 + $0xac] ss:$16 sps:$4 sm:$0xff]  }
  0x20   :  { %1340 = vmatpush1.bf16.msra.mxu1 %v5769_v23  ;;  %1300 = vmatprep.subr.bf16.mxu0 %v5770_v24  ;;  %v5802_v45 = vld [vmem:[%s8720_s26 + $0x384] ss:$16 sps:$4 sm:$0xff]   ;;  %v5805_v50 = vld [vmem:[%s8720_s26 + $0x380] ss:$16 sps:$4 sm:$0xff]   ;;  %v5856_v24 = vld [vmem:[%s8720_s26 + $0xa8] ss:$16 sps:$4 sm:$0xff]  }
  0x21   :  { %1341 = vmatprep.subr.bf16.mxu1 %v5772_v25  ;;  %v58_v46 = vld [vmem:[%s8721_s20] sm:$0xff] }
  0x22   :  { %v6889_v47 = vcombine.high %v58_v46, %v58_v46  ;;  %v5806_v52 = vld [vmem:[%s8720_s26 + $0x164] ss:$16 sps:$4 sm:$0xff]   ;;  %v5810_v54 = vld [vmem:[%s8720_s26 + $0x160] ss:$16 sps:$4 sm:$0xff]   ;;  %v6958_v6 = vcombine.low %v58_v46, %v58_v46  ;;  %v5886_v46 = vld [vmem:[%s8720_s26 + $0x8] ss:$16 sps:$4 sm:$0xff]  }
  0x23   :  { %1301 = vmatpush1.bf16.msra.mxu0 %v5774_v26  ;;  %v5808_v53 = vld [vmem:[%s8720_s26 + $0x364] ss:$16 sps:$4 sm:$0xff]   ;;  %v5811_v55 = vld [vmem:[%s8720_s26 + $0x360] ss:$16 sps:$4 sm:$0xff]   ;;  %v5864_v26 = vld [vmem:[%s8720_s26 + $0x8c] ss:$16 sps:$4 sm:$0xff]  }
  0x24   :  { %1342 = vmatpush1.bf16.msra.mxu1 %v5775_v27  ;;  %1302 = vmatprep.subr.bf16.mxu0 %v5776_v28  ;;  %v5812_v56 = vld [vmem:[%s8720_s26 + $0x144] ss:$16 sps:$4 sm:$0xff]   ;;  %v5816_v58 = vld [vmem:[%s8720_s26 + $0x140] ss:$16 sps:$4 sm:$0xff]   ;;  %v5862_v28 = vld [vmem:[%s8720_s26 + $0x88] ss:$16 sps:$4 sm:$0xff]  }
  0x25   :  { %1343 = vmatprep.subr.bf16.mxu1 %v5778_v29  ;;  %1320 = vmatprep.mubr.bf16.mxu0 %v6889_v47  ;;  %v5814_v57 = vld [vmem:[%s8720_s26 + $0x344] ss:$16 sps:$4 sm:$0xff]   ;;  %v5817_v59 = vld [vmem:[%s8720_s26 + $0x340] ss:$16 sps:$4 sm:$0xff]  }
  0x26   :  { %v5818_v60 = vld [vmem:[%s8720_s26 + $0x124] ss:$16 sps:$4 sm:$0xff]   ;;  %v5822_v62 = vld [vmem:[%s8720_s26 + $0x120] ss:$16 sps:$4 sm:$0xff]  }
  0x27   :  { %1303 = vmatpush1.bf16.msra.mxu0 %v5780_v30  ;;  %v5820_v61 = vld [vmem:[%s8720_s26 + $0x324] ss:$16 sps:$4 sm:$0xff]   ;;  %v5823_v63 = vld [vmem:[%s8720_s26 + $0x320] ss:$16 sps:$4 sm:$0xff]   ;;  %v5870_v30 = vld [vmem:[%s8720_s26 + $0x6c] ss:$16 sps:$4 sm:$0xff]  }
  0x28   :  { %1344 = vmatpush1.bf16.msra.mxu1 %v5781_v31  ;;  %1304 = vmatprep.subr.bf16.mxu0 %v5782_v32  ;;  %v5824_v0 = vld [vmem:[%s8720_s26 + $0x104] ss:$16 sps:$4 sm:$0xff]   ;;  %v5828_v2 = vld [vmem:[%s8720_s26 + $0x100] ss:$16 sps:$4 sm:$0xff]  }
  0x29   :  { %1345 = vmatprep.subr.bf16.mxu1 %v5784_v33  ;;  %v5826_v1 = vld [vmem:[%s8720_s26 + $0x304] ss:$16 sps:$4 sm:$0xff]   ;;  %v5829_v3 = vld [vmem:[%s8720_s26 + $0x300] ss:$16 sps:$4 sm:$0xff]  }
  0x2a   :  { %v5836_v4 = vld [vmem:[%s8720_s26 + $0x4e4] ss:$16 sps:$4 sm:$0xff]   ;;  %v5834_v8 = vld [vmem:[%s8720_s26 + $0x4e0] ss:$16 sps:$4 sm:$0xff]  }
  0x2b   :  { %1305 = vmatpush2.bf16.msra.mxu0 %v5786_v34  ;;  %v5839_v5 = vld [vmem:[%s8720_s26 + $0x604] ss:$16 sps:$4 sm:$0xff]   ;;  %v5837_v9 = vld [vmem:[%s8720_s26 + $0x600] ss:$16 sps:$4 sm:$0xff]   ;;  %v5868_v34 = vld [vmem:[%s8720_s26 + $0x68] ss:$16 sps:$4 sm:$0xff]  }
  0x2c   :  { %1346 = vmatpush2.bf16.msra.mxu1 %v5787_v35  ;;  %1306 = vmatprep.subr.bf16.mxu0 %v5788_v36  ;;  %v5842_v10 = vld [vmem:[%s8720_s26 + $0x4c4] ss:$16 sps:$4 sm:$0xff]   ;;  %v5840_v12 = vld [vmem:[%s8720_s26 + $0x4c0] ss:$16 sps:$4 sm:$0xff]   ;;  %v5876_v36 = vld [vmem:[%s8720_s26 + $0x4c] ss:$16 sps:$4 sm:$0xff]  }
  0x2d   :  { %1347 = vmatprep.subr.bf16.mxu1 %v5790_v37  ;;  %v5848_v14 = vld [vmem:[%s8720_s26 + $0x4a4] ss:$16 sps:$4 sm:$0xff]   ;;  %v5846_v16 = vld [vmem:[%s8720_s26 + $0x4a0] ss:$16 sps:$4 sm:$0xff]  }
  0x2e   :  { %v5855_v19 = vld [vmem:[%s8720_s26 + $0x484] ss:$16 sps:$4 sm:$0xff]   ;;  %v5853_v21 = vld [vmem:[%s8720_s26 + $0x480] ss:$16 sps:$4 sm:$0xff]  }
  0x2f   :  { %1307 = vmatpush2.bf16.msra.mxu0 %v5792_v38  ;;  %v5861_v23 = vld [vmem:[%s8720_s26 + $0x464] ss:$16 sps:$4 sm:$0xff]   ;;  %v5859_v25 = vld [vmem:[%s8720_s26 + $0x460] ss:$16 sps:$4 sm:$0xff]   ;;  %v5874_v38 = vld [vmem:[%s8720_s26 + $0x48] ss:$16 sps:$4 sm:$0xff]  }
  0x30   :  { %1348 = vmatpush2.bf16.msra.mxu1 %v5793_v39  ;;  %1308 = vmatprep.subr.bf16.mxu0 %v5794_v40  ;;  %v5867_v27 = vld [vmem:[%s8720_s26 + $0x444] ss:$16 sps:$4 sm:$0xff]   ;;  %v5865_v29 = vld [vmem:[%s8720_s26 + $0x440] ss:$16 sps:$4 sm:$0xff]   ;;  %v5882_v40 = vld [vmem:[%s8720_s26 + $0x2c] ss:$16 sps:$4 sm:$0xff]  }
  0x31   :  { %1349 = vmatprep.subr.bf16.mxu1 %v5796_v41  ;;  %v5873_v31 = vld [vmem:[%s8720_s26 + $0x424] ss:$16 sps:$4 sm:$0xff]   ;;  %v5871_v35 = vld [vmem:[%s8720_s26 + $0x420] ss:$16 sps:$4 sm:$0xff]  }
  0x32   :  { %v7039_v32 = vld [vmem:[%s8721_s20 + $0x10] sm:$0xff] }
  0x33   :  { %1309 = vmatpush2.bf16.msra.mxu0 %v5798_v42  ;;  %v7043_v33 = vcombine.high %v7039_v32, %v7039_v32  ;;  %v5879_v37 = vld [vmem:[%s8720_s26 + $0x404] ss:$16 sps:$4 sm:$0xff]   ;;  %v5877_v39 = vld [vmem:[%s8720_s26 + $0x400] ss:$16 sps:$4 sm:$0xff]   ;;  %v5880_v42 = vld [vmem:[%s8720_s26 + $0x28] ss:$16 sps:$4 sm:$0xff]  }
  0x34   :  { %1350 = vmatpush2.bf16.msra.mxu1 %v5799_v43  ;;  %1310 = vmatprep.subr.bf16.mxu0 %v5800_v44  ;;  %v5885_v41 = vld [vmem:[%s8720_s26 + $0x5e4] ss:$16 sps:$4 sm:$0xff]   ;;  %v5883_v43 = vld [vmem:[%s8720_s26 + $0x5e0] ss:$16 sps:$4 sm:$0xff]   ;;  %v5888_v44 = vld [vmem:[%s8720_s26 + $0xc] ss:$16 sps:$4 sm:$0xff]  }
  0x35   :  { %1351 = vmatprep.subr.bf16.mxu1 %v5802_v45  ;;  %v5891_v45 = vld [vmem:[%s8720_s26 + $0x5c4] ss:$16 sps:$4 sm:$0xff]  }
  0x37   :  { %1311 = vmatpush2.bf16.msra.mxu0 %v5804_v49  ;;  %v5897_v49 = vld [vmem:[%s8720_s26 + $0x5a4] ss:$16 sps:$4 sm:$0xff]  }
  0x38   :  { %1352 = vmatpush2.bf16.msra.mxu1 %v5805_v50  ;;  %1312 = vmatprep.subr.bf16.mxu0 %v5806_v52  ;;  %v5892_v50 = vld [vmem:[%s8720_s26 + $0x1e8] ss:$16 sps:$4 sm:$0xff]   ;;  %v5895_v52 = vld [vmem:[%s8720_s26 + $0x5a0] ss:$16 sps:$4 sm:$0xff]  }
  0x39   :  { %1353 = vmatprep.subr.bf16.mxu1 %v5808_v53  ;;  %v5900_v53 = vld [vmem:[%s8720_s26 + $0x1cc] ss:$16 sps:$4 sm:$0xff]  }
  0x3b   :  { %1313 = vmatpush2.bf16.msra.mxu0 %v5810_v54  ;;  %v5903_v54 = vld [vmem:[%s8720_s26 + $0x584] ss:$16 sps:$4 sm:$0xff]  }
  0x3c   :  { %1354 = vmatpush2.bf16.msra.mxu1 %v5811_v55  ;;  %1314 = vmatprep.subr.bf16.mxu0 %v5812_v56  ;;  %v5898_v55 = vld [vmem:[%s8720_s26 + $0x1c8] ss:$16 sps:$4 sm:$0xff]   ;;  %v5901_v56 = vld [vmem:[%s8720_s26 + $0x580] ss:$16 sps:$4 sm:$0xff]  }
  0x3d   :  { %1355 = vmatprep.subr.bf16.mxu1 %v5814_v57  ;;  %v5906_v57 = vld [vmem:[%s8720_s26 + $0x1ac] ss:$16 sps:$4 sm:$0xff]  }
  0x3f   :  { %1315 = vmatpush2.bf16.msra.mxu0 %v5816_v58  ;;  %v5909_v58 = vld [vmem:[%s8720_s26 + $0x564] ss:$16 sps:$4 sm:$0xff]  }
  0x40   :  { %1356 = vmatpush2.bf16.msra.mxu1 %v5817_v59  ;;  %1316 = vmatprep.subr.bf16.mxu0 %v5818_v60  ;;  %v5904_v59 = vld [vmem:[%s8720_s26 + $0x1a8] ss:$16 sps:$4 sm:$0xff]   ;;  %v5907_v60 = vld [vmem:[%s8720_s26 + $0x560] ss:$16 sps:$4 sm:$0xff]  }
  0x41   :  { %1357 = vmatprep.subr.bf16.mxu1 %v5820_v61  ;;  %v5912_v61 = vld [vmem:[%s8720_s26 + $0x18c] ss:$16 sps:$4 sm:$0xff]  }
  0x43   :  { %1317 = vmatpush2.bf16.msra.mxu0 %v5822_v62  ;;  %v5915_v62 = vld [vmem:[%s8720_s26 + $0x544] ss:$16 sps:$4 sm:$0xff]  }
  0x44   :  { %1358 = vmatpush2.bf16.msra.mxu1 %v5823_v63  ;;  %1318 = vmatprep.subr.bf16.mxu0 %v5824_v0  ;;  %v5910_v63 = vld [vmem:[%s8720_s26 + $0x188] ss:$16 sps:$4 sm:$0xff]   ;;  %v5913_v0 = vld [vmem:[%s8720_s26 + $0x540] ss:$16 sps:$4 sm:$0xff]  }
  0x45   :  { %1359 = vmatprep.subr.bf16.mxu1 %v5826_v1  ;;  %v5918_v1 = vld [vmem:[%s8720_s26 + $0x16c] ss:$16 sps:$4 sm:$0xff]  }
  0x47   :  { %1319 = vmatpush2.bf16.msra.mxu0 %v5828_v2  ;;  %v5921_v2 = vld [vmem:[%s8720_s26 + $0x524] ss:$16 sps:$4 sm:$0xff]  }
  0x48   :  { %1360 = vmatpush2.bf16.msra.mxu1 %v5829_v3  ;;  %1370 = vmatprep.subr.bf16.mxu0 %v5836_v4  ;;  %v5916_v3 = vld [vmem:[%s8720_s26 + $0x168] ss:$16 sps:$4 sm:$0xff]   ;;  %v5919_v4 = vld [vmem:[%s8720_s26 + $0x520] ss:$16 sps:$4 sm:$0xff]  }
  0x49   :  { %1425 = vmatprep.subr.bf16.mxu1 %v5839_v5  ;;  %v5924_v5 = vld [vmem:[%s8720_s26 + $0x14c] ss:$16 sps:$4 sm:$0xff]  }
  0x4a   :  { %1321 = vmatmul.mubr.bf16.vlgmr.msra.gmra.mxu0 %v6958_v6 }
  0x4b   :  { %1362 = vmatmul.mubr.bf16.vlgmr.msra.gmra.mxu1 %v6960_v7  ;;  %1371 = vmatpush1.bf16.msra.mxu0 %v5834_v8  ;;  %v5927_v8 = vld [vmem:[%s8720_s26 + $0x504] ss:$16 sps:$4 sm:$0xff]  }
  0x4c   :  { %1426 = vmatpush1.bf16.msra.mxu1 %v5837_v9  ;;  %1372 = vmatprep.subr.bf16.mxu0 %v5842_v10  ;;  %v5922_v9 = vld [vmem:[%s8720_s26 + $0x148] ss:$16 sps:$4 sm:$0xff]   ;;  %v5925_v10 = vld [vmem:[%s8720_s26 + $0x500] ss:$16 sps:$4 sm:$0xff]  }
  0x4d   :  { %1443 = vmatprep.mubr.bf16.mxu1 %v6654_v13  ;;  %1452 = vmatprep.subr.bf16.mxu1 %v5845_v11  ;;  %v5932_v11 = vld [vmem:[%s8720_s26 + $0x12c] ss:$16 sps:$4 sm:$0xff]  }
  0x4e   :  { %1402 = vmatprep.mubr.bf16.mxu0 %v7043_v33 }
  0x4f   :  { %1373 = vmatpush1.bf16.msra.mxu0 %v5840_v12  ;;  %v5935_v12 = vld [vmem:[%s8720_s26 + $0x2ec] ss:$16 sps:$4 sm:$0xff]  }
  0x50   :  { %1374 = vmatprep.subr.bf16.mxu0 %v5848_v14  ;;  %v7168_v14 = vcombine.low %v7039_v32, %v7039_v32  ;;  %v5965_v32 = vld [vmem:[%s8720_s26 + $0x24c] ss:$16 sps:$4 sm:$0xff]  }
  0x53   :  { %5194 = vmatmul.mubr.msk.bf16.vlgmr.msra.gmra.mxu1 %vm1284_vm0, %v5849_v17  ;;  %1375 = vmatpush1.bf16.msra.mxu0 %v5846_v16  ;;  %v5933_v16 = vld [vmem:[%s8720_s26 + $0x2e8] ss:$16 sps:$4 sm:$0xff]   ;;  %v5938_v17 = vld [vmem:[%s8720_s26 + $0x10c] ss:$16 sps:$4 sm:$0xff]  }
  0x54   :  { %1453 = vmatpush1.bf16.msra.mxu1 %v5843_v15  ;;  %1376 = vmatprep.subr.bf16.mxu0 %v5855_v19  ;;  %v5930_v15 = vld [vmem:[%s8720_s26 + $0x128] ss:$16 sps:$4 sm:$0xff]  }
  0x55   :  { %1454 = vmatprep.subr.bf16.mxu1 %v5852_v18  ;;  %1484 = vmatprep.mubr.bf16.mxu1 %v6889_v47  ;;  %v5889_v47 = vld [vmem:[%s8720_s26 + $0x5c0] ss:$16 sps:$4 sm:$0xff]   ;;  %v5941_v18 = vld [vmem:[%s8720_s26 + $0x2cc] ss:$16 sps:$4 sm:$0xff]   ;;  %v5936_v19 = vld [vmem:[%s8720_s26 + $0x108] ss:$16 sps:$4 sm:$0xff]  }
  0x57   :  { %1377 = vmatpush1.bf16.msra.mxu0 %v5853_v21  ;;  %v5944_v21 = vld [vmem:[%s8720_s26 + $0x4ec] ss:$16 sps:$4 sm:$0xff]  }
  0x58   :  { %1455 = vmatpush1.bf16.msra.mxu1 %v5850_v20  ;;  %1378 = vmatprep.subr.bf16.mxu0 %v5861_v23  ;;  %v5939_v20 = vld [vmem:[%s8720_s26 + $0x2c8] ss:$16 sps:$4 sm:$0xff]  }
  0x59   :  { %1456 = vmatprep.subr.bf16.mxu1 %v5858_v22  ;;  %v5947_v22 = vld [vmem:[%s8720_s26 + $0x2ac] ss:$16 sps:$4 sm:$0xff]   ;;  %v5942_v23 = vld [vmem:[%s8720_s26 + $0x4e8] ss:$16 sps:$4 sm:$0xff]  }
  0x5b   :  { %1379 = vmatpush1.bf16.msra.mxu0 %v5859_v25  ;;  %v5950_v25 = vld [vmem:[%s8720_s26 + $0x4cc] ss:$16 sps:$4 sm:$0xff]  }
  0x5c   :  { %1457 = vmatpush1.bf16.msra.mxu1 %v5856_v24  ;;  %1380 = vmatprep.subr.bf16.mxu0 %v5867_v27  ;;  %v5945_v24 = vld [vmem:[%s8720_s26 + $0x2a8] ss:$16 sps:$4 sm:$0xff]  }
  0x5d   :  { %1458 = vmatprep.subr.bf16.mxu1 %v5864_v26  ;;  %v5953_v26 = vld [vmem:[%s8720_s26 + $0x28c] ss:$16 sps:$4 sm:$0xff]   ;;  %v5948_v27 = vld [vmem:[%s8720_s26 + $0x4c8] ss:$16 sps:$4 sm:$0xff]  }
  0x5f   :  { %1381 = vmatpush1.bf16.msra.mxu0 %v5865_v29  ;;  %v5959_v29 = vld [vmem:[%s8720_s26 + $0x26c] ss:$16 sps:$4 sm:$0xff]  }
  0x60   :  { %1459 = vmatpush1.bf16.msra.mxu1 %v5862_v28  ;;  %1382 = vmatprep.subr.bf16.mxu0 %v5873_v31  ;;  %v5956_v28 = vld [vmem:[%s8720_s26 + $0x4ac] ss:$16 sps:$4 sm:$0xff]  }
  0x61   :  { %1460 = vmatprep.subr.bf16.mxu1 %v5870_v30  ;;  %v5954_v30 = vld [vmem:[%s8720_s26 + $0x4a8] ss:$16 sps:$4 sm:$0xff]   ;;  %v5962_v31 = vld [vmem:[%s8720_s26 + $0x48c] ss:$16 sps:$4 sm:$0xff]  }
  0x63   :  { %1383 = vmatpush1.bf16.msra.mxu0 %v5871_v35  ;;  %v5968_v35 = vld [vmem:[%s8720_s26 + $0x46c] ss:$16 sps:$4 sm:$0xff]  }
  0x64   :  { %1461 = vmatpush1.bf16.msra.mxu1 %v5868_v34  ;;  %1384 = vmatprep.subr.bf16.mxu0 %v5879_v37  ;;  %v5963_v34 = vld [vmem:[%s8720_s26 + $0x248] ss:$16 sps:$4 sm:$0xff]  }
  0x65   :  { %1462 = vmatprep.subr.bf16.mxu1 %v5876_v36  ;;  %v5971_v36 = vld [vmem:[%s8720_s26 + $0x22c] ss:$16 sps:$4 sm:$0xff]   ;;  %v5966_v37 = vld [vmem:[%s8720_s26 + $0x468] ss:$16 sps:$4 sm:$0xff]  }
  0x67   :  { %1385 = vmatpush1.bf16.msra.mxu0 %v5877_v39  ;;  %v5974_v39 = vld [vmem:[%s8720_s26 + $0x44c] ss:$16 sps:$4 sm:$0xff]  }
  0x68   :  { %1463 = vmatpush1.bf16.msra.mxu1 %v5874_v38  ;;  %1386 = vmatprep.subr.bf16.mxu0 %v5885_v41  ;;  %v5969_v38 = vld [vmem:[%s8720_s26 + $0x228] ss:$16 sps:$4 sm:$0xff]  }
  0x69   :  { %1464 = vmatprep.subr.bf16.mxu1 %v5882_v40  ;;  %v5977_v40 = vld [vmem:[%s8720_s26 + $0x20c] ss:$16 sps:$4 sm:$0xff]   ;;  %v5972_v41 = vld [vmem:[%s8720_s26 + $0x448] ss:$16 sps:$4 sm:$0xff]  }
  0x6b   :  { %1387 = vmatpush2.bf16.msra.mxu0 %v5883_v43  ;;  %v5980_v43 = vld [vmem:[%s8720_s26 + $0x42c] ss:$16 sps:$4 sm:$0xff]  }
  0x6c   :  { %1465 = vmatpush1.bf16.msra.mxu1 %v5880_v42  ;;  %1388 = vmatprep.subr.bf16.mxu0 %v5891_v45  ;;  %v5975_v42 = vld [vmem:[%s8720_s26 + $0x208] ss:$16 sps:$4 sm:$0xff]  }
  0x6d   :  { %1466 = vmatprep.subr.bf16.mxu1 %v5888_v44  ;;  %v5983_v44 = vld [vmem:[%s8720_s26 + $0x3ec] ss:$16 sps:$4 sm:$0xff]   ;;  %v5978_v45 = vld [vmem:[%s8720_s26 + $0x428] ss:$16 sps:$4 sm:$0xff]  }
  0x6f   :  { %1389 = vmatpush2.bf16.msra.mxu0 %v5889_v47  ;;  %v5986_v47 = vld [vmem:[%s8720_s26 + $0x40c] ss:$16 sps:$4 sm:$0xff]  }
  0x70   :  { %1467 = vmatpush1.bf16.msra.mxu1 %v5886_v46  ;;  %1390 = vmatprep.subr.bf16.mxu0 %v5897_v49  ;;  %v5981_v46 = vld [vmem:[%s8720_s26 + $0x3e8] ss:$16 sps:$4 sm:$0xff]  }
  0x71   :  { %1468 = vmatprep.subr.bf16.mxu1 %v5894_v48  ;;  %v5989_v48 = vld [vmem:[%s8720_s26 + $0x3cc] ss:$16 sps:$4 sm:$0xff]   ;;  %v5984_v49 = vld [vmem:[%s8720_s26 + $0x408] ss:$16 sps:$4 sm:$0xff]  }
  0x73   :  { %1391 = vmatpush2.bf16.msra.mxu0 %v5895_v52  ;;  %v5992_v52 = vld [vmem:[%s8720_s26 + $0x5ec] ss:$16 sps:$4 sm:$0xff]  }
  0x74   :  { %1469 = vmatpush2.bf16.msra.mxu1 %v5892_v50  ;;  %1392 = vmatprep.subr.bf16.mxu0 %v5903_v54  ;;  %v5987_v50 = vld [vmem:[%s8720_s26 + $0x3c8] ss:$16 sps:$4 sm:$0xff]  }
  0x75   :  { %1470 = vmatprep.subr.bf16.mxu1 %v5900_v53  ;;  %v5995_v53 = vld [vmem:[%s8720_s26 + $0x3ac] ss:$16 sps:$4 sm:$0xff]   ;;  %v5990_v54 = vld [vmem:[%s8720_s26 + $0x5e8] ss:$16 sps:$4 sm:$0xff]  }
  0x77   :  { %1393 = vmatpush2.bf16.msra.mxu0 %v5901_v56  ;;  %v5998_v56 = vld [vmem:[%s8720_s26 + $0x5cc] ss:$16 sps:$4 sm:$0xff]  }
  0x78   :  { %1471 = vmatpush2.bf16.msra.mxu1 %v5898_v55  ;;  %1394 = vmatprep.subr.bf16.mxu0 %v5909_v58  ;;  %v5993_v55 = vld [vmem:[%s8720_s26 + $0x3a8] ss:$16 sps:$4 sm:$0xff]  }
  0x79   :  { %1472 = vmatprep.subr.bf16.mxu1 %v5906_v57  ;;  %v6001_v57 = vld [vmem:[%s8720_s26 + $0x38c] ss:$16 sps:$4 sm:$0xff]   ;;  %v5996_v58 = vld [vmem:[%s8720_s26 + $0x5c8] ss:$16 sps:$4 sm:$0xff]  }
  0x7b   :  { %1395 = vmatpush2.bf16.msra.mxu0 %v5907_v60  ;;  %v6004_v60 = vld [vmem:[%s8720_s26 + $0x5ac] ss:$16 sps:$4 sm:$0xff]  }
  0x7c   :  { %1473 = vmatpush2.bf16.msra.mxu1 %v5904_v59  ;;  %1396 = vmatprep.subr.bf16.mxu0 %v5915_v62  ;;  %v5999_v59 = vld [vmem:[%s8720_s26 + $0x388] ss:$16 sps:$4 sm:$0xff]  }
  0x7d   :  { %1474 = vmatprep.subr.bf16.mxu1 %v5912_v61  ;;  %v6007_v61 = vld [vmem:[%s8720_s26 + $0x36c] ss:$16 sps:$4 sm:$0xff]   ;;  %v6002_v62 = vld [vmem:[%s8720_s26 + $0x5a8] ss:$16 sps:$4 sm:$0xff]  }
  0x7f   :  { %1397 = vmatpush2.bf16.msra.mxu0 %v5913_v0  ;;  %v6010_v0 = vld [vmem:[%s8720_s26 + $0x58c] ss:$16 sps:$4 sm:$0xff]  }
  0x80   :  { %1475 = vmatpush2.bf16.msra.mxu1 %v5910_v63  ;;  %1398 = vmatprep.subr.bf16.mxu0 %v5921_v2  ;;  %v6005_v63 = vld [vmem:[%s8720_s26 + $0x368] ss:$16 sps:$4 sm:$0xff]  }
  0x81   :  { %1476 = vmatprep.subr.bf16.mxu1 %v5918_v1  ;;  %v6013_v1 = vld [vmem:[%s8720_s26 + $0x34c] ss:$16 sps:$4 sm:$0xff]   ;;  %v6008_v2 = vld [vmem:[%s8720_s26 + $0x588] ss:$16 sps:$4 sm:$0xff]  }
  0x83   :  { %1399 = vmatpush2.bf16.msra.mxu0 %v5919_v4  ;;  %v6016_v4 = vld [vmem:[%s8720_s26 + $0x56c] ss:$16 sps:$4 sm:$0xff]  }
  0x84   :  { %1477 = vmatpush2.bf16.msra.mxu1 %v5916_v3  ;;  %1400 = vmatprep.subr.bf16.mxu0 %v5927_v8  ;;  %v6011_v3 = vld [vmem:[%s8720_s26 + $0x348] ss:$16 sps:$4 sm:$0xff]  }
  0x85   :  { %1478 = vmatprep.subr.bf16.mxu1 %v5924_v5  ;;  %v6019_v5 = vld [vmem:[%s8720_s26 + $0x32c] ss:$16 sps:$4 sm:$0xff]   ;;  %v6014_v8 = vld [vmem:[%s8720_s26 + $0x568] ss:$16 sps:$4 sm:$0xff]  }
  0x87   :  { %1401 = vmatpush2.bf16.msra.mxu0 %v5925_v10  ;;  %v6022_v10 = vld [vmem:[%s8720_s26 + $0x54c] ss:$16 sps:$4 sm:$0xff]  }
  0x88   :  { %1479 = vmatpush2.bf16.msra.mxu1 %v5922_v9  ;;  %1493 = vmatprep.subr.bf16.mxu0 %v5935_v12  ;;  %v6017_v9 = vld [vmem:[%s8720_s26 + $0x328] ss:$16 sps:$4 sm:$0xff]  }
  0x89   :  { %1480 = vmatprep.subr.bf16.mxu1 %v5932_v11  ;;  %v6025_v11 = vld [vmem:[%s8720_s26 + $0x30c] ss:$16 sps:$4 sm:$0xff]   ;;  %v6020_v12 = vld [vmem:[%s8720_s26 + $0x548] ss:$16 sps:$4 sm:$0xff]  }
  0x8a   :  { %1403 = vmatmul.mubr.bf16.vlgmr.msra.gmra.mxu0 %v7168_v14 }
  0x8b   :  { %1494 = vmatpush1.bf16.msra.mxu0 %v5933_v16  ;;  %1525 = vmatprep.mubr.bf16.mxu0 %v6900_v51  ;;  %v5951_v51 = vld [vmem:[%s8720_s26 + $0x288] ss:$16 sps:$4 sm:$0xff]   ;;  %v6028_v16 = vld [vmem:[%s8720_s26 + $0x52c] ss:$16 sps:$4 sm:$0xff]  }
  0x8c   :  { %1481 = vmatpush2.bf16.msra.mxu1 %v5930_v15  ;;  %1495 = vmatprep.subr.bf16.mxu0 %v5941_v18  ;;  %v6023_v15 = vld [vmem:[%s8720_s26 + $0x308] ss:$16 sps:$4 sm:$0xff]  }
  0x8d   :  { %1482 = vmatprep.subr.bf16.mxu1 %v5938_v17  ;;  %v6031_v17 = vld [vmem:[%s8720_s26 + $0x60c] ss:$16 sps:$4 sm:$0xff]   ;;  %v6026_v18 = vld [vmem:[%s8720_s26 + $0x528] ss:$16 sps:$4 sm:$0xff]  }
  0x8f   :  { %1496 = vmatpush1.bf16.msra.mxu0 %v5939_v20  ;;  %v6034_v20 = vld [vmem:[%s8720_s26 + $0x50c] ss:$16 sps:$4 sm:$0xff]  }
  0x90   :  { %1483 = vmatpush2.bf16.msra.mxu1 %v5936_v19  ;;  %1497 = vmatprep.subr.bf16.mxu0 %v5947_v22  ;;  %v6029_v19 = vld [vmem:[%s8720_s26 + $0x608] ss:$16 sps:$4 sm:$0xff]  }
  0x91   :  { %1534 = vmatprep.subr.bf16.mxu1 %v5944_v21  ;;  %v6037_v21 = vld [vmem:[%s8701_s3 + $0x74] ss:$8 sps:$4 sm:$0xff]   ;;  %v6032_v22 = vld [vmem:[%s8720_s26 + $0x508] ss:$16 sps:$4 sm:$0xff]  }
  0x93   :  { %1485 = vmatmul.mubr.bf16.vlgmr.msra.gmra.mxu1 %v6958_v6  ;;  %1498 = vmatpush1.bf16.msra.mxu0 %v5945_v24  ;;  %v5957_v6 = vld [vmem:[%s8720_s26 + $0x268] ss:$16 sps:$4 sm:$0xff]   ;;  %v6040_v24 = vld [vmem:[%s8701_s3 + $0x64] ss:$8 sps:$4 sm:$0xff]  }
  0x94   :  { %1535 = vmatpush1.bf16.msra.mxu1 %v5942_v23  ;;  %1499 = vmatprep.subr.bf16.mxu0 %v5953_v26  ;;  %v6035_v23 = vld [vmem:[%s8701_s3 + $0x70] ss:$8 sps:$4 sm:$0xff]   ;;  %v6043_v26 = vld [vmem:[%s8701_s3 + $0x54] ss:$8 sps:$4 sm:$0xff]  }
  0x95   :  { %1536 = vmatprep.subr.bf16.mxu1 %v5950_v25  ;;  %1566 = vmatprep.mubr.bf16.mxu1 %v7043_v33  ;;  %v5960_v33 = vld [vmem:[%s8720_s26 + $0x488] ss:$16 sps:$4 sm:$0xff]  }
  0x96   :  { %v6631_v25 = vld [vmem:[%s8721_s20 + $0x18] ss:$0 sps:$4 sm:$0xff]  }
  0x97   :  { %1500 = vmatpush1.bf16.msra.mxu0 %v5951_v51  ;;  %v6083_v51 = vld [vmem:[%s8701_s3 + $0x170] ss:$8 sps:$4 sm:$0xff]  }
  0x98   :  { %1537 = vmatpush1.bf16.msra.mxu1 %v5948_v27  ;;  %1501 = vmatprep.subr.bf16.mxu0 %v5959_v29  ;;  %v6041_v27 = vld [vmem:[%s8701_s3 + $0x50] ss:$8 sps:$4 sm:$0xff]   ;;  %v6088_v29 = vld [vmem:[%s8701_s3 + $0x164] ss:$8 sps:$4 sm:$0xff]  }
  0x99   :  { %1538 = vmatprep.subr.bf16.mxu1 %v5956_v28  ;;  %v6085_v28 = vld [vmem:[%s8701_s3 + $0x174] ss:$8 sps:$4 sm:$0xff]  }
  0x9b   :  { %1502 = vmatpush1.bf16.msra.mxu0 %v5957_v6  ;;  %v6086_v6 = vld [vmem:[%s8701_s3 + $0x160] ss:$8 sps:$4 sm:$0xff]  }
  0x9c   :  { %1539 = vmatpush1.bf16.msra.mxu1 %v5954_v30  ;;  %1503 = vmatprep.subr.bf16.mxu0 %v5965_v32  ;;  %v6044_v30 = vld [vmem:[%s8701_s3 + $0x40] ss:$8 sps:$4 sm:$0xff]   ;;  %v6091_v32 = vld [vmem:[%s8701_s3 + $0x154] ss:$8 sps:$4 sm:$0xff]  }
  0x9d   :  { %1540 = vmatprep.subr.bf16.mxu1 %v5962_v31  ;;  %v6049_v31 = vld [vmem:[%s8701_s3 + $0x34] ss:$8 sps:$4 sm:$0xff]  }
  0x9f   :  { %1504 = vmatpush1.bf16.msra.mxu0 %v5963_v34  ;;  %v6052_v34 = vld [vmem:[%s8701_s3 + $0x24] ss:$8 sps:$4 sm:$0xff]  }
  0xa0   :  { %1541 = vmatpush1.bf16.msra.mxu1 %v5960_v33  ;;  %1505 = vmatprep.subr.bf16.mxu0 %v5971_v36  ;;  %v6047_v33 = vld [vmem:[%s8701_s3 + $0x30] ss:$8 sps:$4 sm:$0xff]   ;;  %v6094_v36 = vld [vmem:[%s8701_s3 + $0x144] ss:$8 sps:$4 sm:$0xff]  }
  0xa1   :  { %1542 = vmatprep.subr.bf16.mxu1 %v5968_v35  ;;  %v6089_v35 = vld [vmem:[%s8701_s3 + $0x150] ss:$8 sps:$4 sm:$0xff]  }
  0xa3   :  { %1506 = vmatpush1.bf16.msra.mxu0 %v5969_v38  ;;  %v6092_v38 = vld [vmem:[%s8701_s3 + $0x140] ss:$8 sps:$4 sm:$0xff]  }
  0xa4   :  { %1543 = vmatpush1.bf16.msra.mxu1 %v5966_v37  ;;  %1507 = vmatprep.subr.bf16.mxu0 %v5977_v40  ;;  %v6050_v37 = vld [vmem:[%s8701_s3 + $0x20] ss:$8 sps:$4 sm:$0xff]   ;;  %v6097_v40 = vld [vmem:[%s8701_s3 + $0x134] ss:$8 sps:$4 sm:$0xff]  }
  0xa5   :  { %1544 = vmatprep.subr.bf16.mxu1 %v5974_v39  ;;  %v6055_v39 = vld [vmem:[%s8701_s3 + $0x14] ss:$8 sps:$4 sm:$0xff]  }
  0xa7   :  { %1508 = vmatpush1.bf16.msra.mxu0 %v5975_v42  ;;  %v6095_v42 = vld [vmem:[%s8701_s3 + $0x130] ss:$8 sps:$4 sm:$0xff]  }
  0xa8   :  { %1545 = vmatpush1.bf16.msra.mxu1 %v5972_v41  ;;  %1509 = vmatprep.subr.bf16.mxu0 %v5983_v44  ;;  %v6053_v41 = vld [vmem:[%s8701_s3 + $0x10] ss:$8 sps:$4 sm:$0xff]   ;;  %v6100_v44 = vld [vmem:[%s8701_s3 + $0x124] ss:$8 sps:$4 sm:$0xff]  }
  0xa9   :  { %1546 = vmatprep.subr.bf16.mxu1 %v5980_v43  ;;  %v6058_v43 = vld [vmem:[%s8701_s3 + $0x4] ss:$8 sps:$4 sm:$0xff]  }
  0xab   :  { %1510 = vmatpush2.bf16.msra.mxu0 %v5981_v46  ;;  %v6098_v46 = vld [vmem:[%s8701_s3 + $0x120] ss:$8 sps:$4 sm:$0xff]  }
  0xac   :  { %1547 = vmatpush1.bf16.msra.mxu1 %v5978_v45  ;;  %1511 = vmatprep.subr.bf16.mxu0 %v5989_v48  ;;  %v6056_v45 = vld [vmem:[%s8701_s3] ss:$8 sps:$4 sm:$0xff]   ;;  %v6103_v48 = vld [vmem:[%s8701_s3 + $0x114] ss:$8 sps:$4 sm:$0xff]  }
  0xad   :  { %1548 = vmatprep.subr.bf16.mxu1 %v5986_v47  ;;  %v6061_v47 = vld [vmem:[%s8701_s3 + $0xf4] ss:$8 sps:$4 sm:$0xff]  }
  0xaf   :  { %1512 = vmatpush2.bf16.msra.mxu0 %v5987_v50  ;;  %v6101_v50 = vld [vmem:[%s8701_s3 + $0x110] ss:$8 sps:$4 sm:$0xff]  }
  0xb0   :  { %1549 = vmatpush1.bf16.msra.mxu1 %v5984_v49  ;;  %1513 = vmatprep.subr.bf16.mxu0 %v5995_v53  ;;  %v6059_v49 = vld [vmem:[%s8701_s3 + $0xf0] ss:$8 sps:$4 sm:$0xff]   ;;  %v6106_v53 = vld [vmem:[%s8701_s3 + $0x104] ss:$8 sps:$4 sm:$0xff]  }
  0xb1   :  { %1550 = vmatprep.subr.bf16.mxu1 %v5992_v52  ;;  %v6064_v52 = vld [vmem:[%s8701_s3 + $0xe4] ss:$8 sps:$4 sm:$0xff]  }
  0xb3   :  { %1514 = vmatpush2.bf16.msra.mxu0 %v5993_v55  ;;  %v6104_v55 = vld [vmem:[%s8701_s3 + $0x100] ss:$8 sps:$4 sm:$0xff]  }
  0xb4   :  { %1551 = vmatpush2.bf16.msra.mxu1 %v5990_v54  ;;  %1515 = vmatprep.subr.bf16.mxu0 %v6001_v57  ;;  %v6062_v54 = vld [vmem:[%s8701_s3 + $0xe0] ss:$8 sps:$4 sm:$0xff]   ;;  %v6109_v57 = vld [vmem:[%s8701_s3 + $0x1f4] ss:$8 sps:$4 sm:$0xff]  }
  0xb5   :  { %1552 = vmatprep.subr.bf16.mxu1 %v5998_v56  ;;  %v6067_v56 = vld [vmem:[%s8701_s3 + $0xd4] ss:$8 sps:$4 sm:$0xff]  }
  0xb7   :  { %1516 = vmatpush2.bf16.msra.mxu0 %v5999_v59  ;;  %v6107_v59 = vld [vmem:[%s8701_s3 + $0x1f0] ss:$8 sps:$4 sm:$0xff]  }
  0xb8   :  { %1553 = vmatpush2.bf16.msra.mxu1 %v5996_v58  ;;  %1517 = vmatprep.subr.bf16.mxu0 %v6007_v61  ;;  %v6065_v58 = vld [vmem:[%s8701_s3 + $0xd0] ss:$8 sps:$4 sm:$0xff]   ;;  %v6112_v61 = vld [vmem:[%s8701_s3 + $0x1e4] ss:$8 sps:$4 sm:$0xff]  }
  0xb9   :  { %1554 = vmatprep.subr.bf16.mxu1 %v6004_v60  ;;  %v6070_v60 = vld [vmem:[%s8701_s3 + $0xc4] ss:$8 sps:$4 sm:$0xff]  }
  0xbb   :  { %1518 = vmatpush2.bf16.msra.mxu0 %v6005_v63  ;;  %v6110_v63 = vld [vmem:[%s8701_s3 + $0x1e0] ss:$8 sps:$4 sm:$0xff]  }
  0xbc   :  { %1555 = vmatpush2.bf16.msra.mxu1 %v6002_v62  ;;  %1519 = vmatprep.subr.bf16.mxu0 %v6013_v1  ;;  %v6068_v62 = vld [vmem:[%s8701_s3 + $0xc0] ss:$8 sps:$4 sm:$0xff]   ;;  %v6115_v1 = vld [vmem:[%s8701_s3 + $0x1d4] ss:$8 sps:$4 sm:$0xff]  }
  0xbd   :  { %1556 = vmatprep.subr.bf16.mxu1 %v6010_v0  ;;  %v6073_v0 = vld [vmem:[%s8701_s3 + $0xb4] ss:$8 sps:$4 sm:$0xff]  }
  0xbf   :  { %1520 = vmatpush2.bf16.msra.mxu0 %v6011_v3  ;;  %v6113_v3 = vld [vmem:[%s8701_s3 + $0x1d0] ss:$8 sps:$4 sm:$0xff]  }
  0xc0   :  { %1557 = vmatpush2.bf16.msra.mxu1 %v6008_v2  ;;  %1521 = vmatprep.subr.bf16.mxu0 %v6019_v5  ;;  %v6071_v2 = vld [vmem:[%s8701_s3 + $0xb0] ss:$8 sps:$4 sm:$0xff]   ;;  %v6118_v5 = vld [vmem:[%s8701_s3 + $0x1c4] ss:$8 sps:$4 sm:$0xff]  }
  0xc1   :  { %1558 = vmatprep.subr.bf16.mxu1 %v6016_v4  ;;  %v6076_v4 = vld [vmem:[%s8701_s3 + $0xa4] ss:$8 sps:$4 sm:$0xff]  }
  0xc3   :  { %1522 = vmatpush2.bf16.msra.mxu0 %v6017_v9  ;;  %v6116_v9 = vld [vmem:[%s8701_s3 + $0x1c0] ss:$8 sps:$4 sm:$0xff]  }
  0xc4   :  { %1559 = vmatpush2.bf16.msra.mxu1 %v6014_v8  ;;  %1523 = vmatprep.subr.bf16.mxu0 %v6025_v11  ;;  %v6074_v8 = vld [vmem:[%s8701_s3 + $0xa0] ss:$8 sps:$4 sm:$0xff]   ;;  %v6077_v11 = vld [vmem:[%s8701_s3 + $0x90] ss:$8 sps:$4 sm:$0xff]  }
  0xc5   :  { %1560 = vmatprep.subr.bf16.mxu1 %v6022_v10  ;;  %v6079_v10 = vld [vmem:[%s8701_s3 + $0x94] ss:$8 sps:$4 sm:$0xff]  }
  0xc7   :  { %1524 = vmatpush2.bf16.msra.mxu0 %v6023_v15  ;;  %v6080_v15 = vld [vmem:[%s8701_s3 + $0x80] ss:$8 sps:$4 sm:$0xff]  }
  0xc8   :  { %1561 = vmatpush2.bf16.msra.mxu1 %v6020_v12  ;;  %1589 = vmatprep.subr.bf16.mxu0 %v6031_v17  ;;  %v6082_v12 = vld [vmem:[%s8701_s3 + $0x84] ss:$8 sps:$4 sm:$0xff]  }
  0xc9   :  { %1562 = vmatprep.subr.bf16.mxu1 %v6028_v16 }
  0xca   :  { %1526 = vmatmul.mubr.bf16.vlgmr.msra.gmra.mxu0 %v6960_v7  ;;  %v6038_v7 = vld [vmem:[%s8701_s3 + $0x60] ss:$8 sps:$4 sm:$0xff]  }
  0xcb   :  { %1590 = vmatpush1.bf16.msra.mxu0 %v6029_v19  ;;  %1607 = vmatprep.mubr.bf16.mxu0 %v6654_v13 }
  0xcc   :  { %1563 = vmatpush2.bf16.msra.mxu1 %v6026_v18  ;;  %2020 = vmatprep.subr.bf16.mxu0 %v6037_v21  ;;  %v6119_v21 = vld [vmem:[%s8701_s3 + $0x1b0] ss:$8 sps:$4 sm:$0xff]  }
  0xcd   :  { %1564 = vmatprep.subr.bf16.mxu1 %v6034_v20  ;;  %v6121_v20 = vld [vmem:[%s8701_s3 + $0x1b4] ss:$8 sps:$4 sm:$0xff]  }
  0xd0   :  { %1565 = vmatpush2.bf16.msra.mxu1 %v6032_v22 }
  0xd1   :  { %2061 = vmatprep.subr.bf16.mxu1 %v6085_v28  ;;  %v6125_v28 = vld [vmem:[%s8701_s3 + $0x190] ss:$8 sps:$4 sm:$0xff]  }
  0xd2   :  { %5195 = vmatmul.mubr.msk.bf16.vlgmr.msra.gmra.mxu0 %vm1284_vm0, %v6631_v25  ;;  %v6124_v25 = vld [vmem:[%s8701_s3 + $0x1a4] ss:$8 sps:$4 sm:$0xff]  }
  0xd3   :  { %1567 = vmatmul.mubr.bf16.vlgmr.msra.gmra.mxu1 %v7168_v14  ;;  %2021 = vmatpush1.bf16.msra.mxu0 %v6035_v23  ;;  %v6046_v14 = vld [vmem:[%s8701_s3 + $0x44] ss:$8 sps:$4 sm:$0xff]  }
  0xd4   :  { %2022 = vmatprep.subr.bf16.mxu0 %v6040_v24  ;;  %2062 = vmatpush1.bf16.msra.mxu1 %v6083_v51  ;;  %v6127_v51 = vld [vmem:[%s8701_s3 + $0x194] ss:$8 sps:$4 sm:$0xff]  }
  0xd5   :  { %2063 = vmatprep.subr.bf16.mxu1 %v6088_v29 }
  0xd7   :  { %2023 = vmatpush1.bf16.msra.mxu0 %v6038_v7 }
  0xd8   :  { %2024 = vmatprep.subr.bf16.mxu0 %v6043_v26  ;;  %2064 = vmatpush1.bf16.msra.mxu1 %v6086_v6  ;;  %v6122_v26 = vld [vmem:[%s8701_s3 + $0x1a0] ss:$8 sps:$4 sm:$0xff]   ;;  %v6130_v6 = vld [vmem:[%s8701_s3 + $0x184] ss:$8 sps:$4 sm:$0xff]  }
  0xd9   :  { %2065 = vmatprep.subr.bf16.mxu1 %v6091_v32  ;;  %v260_v32 = vlaneseq }
  0xdb   :  { %2025 = vmatpush1.bf16.msra.mxu0 %v6041_v27 }
  0xdc   :  { %2026 = vmatprep.subr.bf16.mxu0 %v6046_v14  ;;  %2066 = vmatpush1.bf16.msra.mxu1 %v6089_v35 }
  0xdd   :  { %2067 = vmatprep.subr.bf16.mxu1 %v6094_v36 }
  0xdf   :  { %2027 = vmatpush1.bf16.msra.mxu0 %v6044_v30 }
  0xe0   :  { %2028 = vmatprep.subr.bf16.mxu0 %v6049_v31  ;;  %2068 = vmatpush1.bf16.msra.mxu1 %v6092_v38  ;;  %v6128_v31 = vld [vmem:[%s8701_s3 + $0x180] ss:$8 sps:$4 sm:$0xff]  }
  0xe1   :  { %2069 = vmatprep.subr.bf16.mxu1 %v6097_v40 }
  0xe3   :  { %2029 = vmatpush1.bf16.msra.mxu0 %v6047_v33  ;;  %v7577_v33 = vshrl.u32 %v260_v32, 7 }
  0xe4   :  { %2030 = vmatprep.subr.bf16.mxu0 %v6052_v34  ;;  %2070 = vmatpush1.bf16.msra.mxu1 %v6095_v42 }
  0xe5   :  { %2071 = vmatprep.subr.bf16.mxu1 %v6100_v44 }
  0xe7   :  { %2031 = vmatpush1.bf16.msra.mxu0 %v6050_v37 }
  0xe8   :  { %2032 = vmatprep.subr.bf16.mxu0 %v6055_v39  ;;  %2072 = vmatpush1.bf16.msra.mxu1 %v6098_v46 }
  0xe9   :  { %2073 = vmatprep.subr.bf16.mxu1 %v6103_v48 }
  0xeb   :  { %2033 = vmatpush1.bf16.msra.mxu0 %v6053_v41 }
  0xec   :  { %2034 = vmatprep.subr.bf16.mxu0 %v6058_v43  ;;  %2074 = vmatpush1.bf16.msra.mxu1 %v6101_v50 }
  0xed   :  { %2075 = vmatprep.subr.bf16.mxu1 %v6106_v53 }
  0xef   :  { %2035 = vmatpush1.bf16.msra.mxu0 %v6056_v45 }
  0xf0   :  { %2036 = vmatprep.subr.bf16.mxu0 %v6061_v47  ;;  %2076 = vmatpush1.bf16.msra.mxu1 %v6104_v55 }
  0xf1   :  { %2077 = vmatprep.subr.bf16.mxu1 %v6109_v57 }
  0xf3   :  { %2037 = vmatpush2.bf16.msra.mxu0 %v6059_v49 }
  0xf4   :  { %2038 = vmatprep.subr.bf16.mxu0 %v6064_v52  ;;  %2078 = vmatpush2.bf16.msra.mxu1 %v6107_v59 }
  0xf5   :  { %2079 = vmatprep.subr.bf16.mxu1 %v6112_v61 }
  0xf7   :  { %2039 = vmatpush2.bf16.msra.mxu0 %v6062_v54 }
  0xf8   :  { %2040 = vmatprep.subr.bf16.mxu0 %v6067_v56  ;;  %2080 = vmatpush2.bf16.msra.mxu1 %v6110_v63 }
  0xf9   :  { %2081 = vmatprep.subr.bf16.mxu1 %v6115_v1 }
  0xfb   :  { %2041 = vmatpush2.bf16.msra.mxu0 %v6065_v58 }
  0xfc   :  { %2042 = vmatprep.subr.bf16.mxu0 %v6070_v60  ;;  %2082 = vmatpush2.bf16.msra.mxu1 %v6113_v3 }
  0xfd   :  { %2083 = vmatprep.subr.bf16.mxu1 %v6118_v5 }
  0xff   :  { %2043 = vmatpush2.bf16.msra.mxu0 %v6068_v62 }
 0x100   :  { %2044 = vmatprep.subr.bf16.mxu0 %v6073_v0  ;;  %2084 = vmatpush2.bf16.msra.mxu1 %v6116_v9 }
 0x101   :  { %2085 = vmatprep.subr.bf16.mxu1 %v6121_v20 }
 0x103   :  { %2045 = vmatpush2.bf16.msra.mxu0 %v6071_v2 }
 0x104   :  { %2046 = vmatprep.subr.bf16.mxu0 %v6076_v4  ;;  %2086 = vmatpush2.bf16.msra.mxu1 %v6119_v21 }
 0x105   :  { %2087 = vmatprep.subr.bf16.mxu1 %v6124_v25 }
 0x107   :  { %2047 = vmatpush2.bf16.msra.mxu0 %v6074_v8 }
 0x108   :  { %2048 = vmatprep.subr.bf16.mxu0 %v6079_v10  ;;  %2088 = vmatpush2.bf16.msra.mxu1 %v6122_v26 }
 0x109   :  { %2089 = vmatprep.subr.bf16.mxu1 %v6127_v51 }
 0x10a   :  { %v1322_v16 = vpop.f32.mrf.mxu0 }
 0x10b   :  { %v1363_v17 = vpop.f32.mrf.mxu1  ;;  %2049 = vmatpush2.bf16.msra.mxu0 %v6077_v11 }
 0x10c   :  { %v1324_v18 = vpop.f32.mrf.mxu0  ;;  %2050 = vmatprep.subr.bf16.mxu0 %v6082_v12  ;;  %2090 = vmatpush2.bf16.msra.mxu1 %v6125_v28 }
 0x10d   :  { %v1365_v19 = vpop.f32.mrf.mxu1  ;;  %2091 = vmatprep.subr.bf16.mxu1 %v6130_v6 }
 0x10e   :  { %v1326_v22 = vpop.f32.mrf.mxu0 }
 0x10f   :  { %v1367_v23 = vpop.f32.mrf.mxu1  ;;  %2051 = vmatpush2.bf16.msra.mxu0 %v6080_v15 }
 0x110   :  { %v1327_v24 = vpop.f32.mrf.mxu0  ;;  %2092 = vmatpush2.bf16.msra.mxu1 %v6128_v31 }
 0x111   :  { %v1368_v7 = vpop.f32.mrf.mxu1 }
 0x113   :  { %v1445_v27 = vpop.f32.mrf.mxu1 }
 0x115   :  { %v1447_v14 = vpop.f32.mrf.mxu1 }
 0x117   :  { %v1449_v29 = vpop.f32.mrf.mxu1 }
 0x119   :  { %v1450_v30 = vpop.f32.mrf.mxu1 }
 0x11a   :  { %22 = vsyncpa [#allocation3], 0  ;;  %v7580_v34 = vsub.s32 0, %v7577_v33  ;;  %v258_v35 = vld [vmem:[%s8700_s2] sm:$0xf]  ;;  %v7586_v36 = vsub.s32 1, %v7577_v33 }
 0x11b   :  { %v7591_v60 = vsub.s32 2, %v7577_v33  ;;  %v7594_v61 = vsub.s32 3, %v7577_v33  ;;  %v6133_v51 = vld [vmem:[%s8703_s5 + $0x70] sm:$0xff]   ;;  %v6135_v29 = vld [vmem:[%s8703_s5 + $0x68] sm:$0xff]   ;;  %v6137_v6 = vld [vmem:[%s8703_s5 + $0x60] sm:$0xff]   ;;  %vm6656_vm1 = vmmov 0  }
 0x11c   :  { %v263_v37 = vrot.slane %v258_v35, %v7580_v34  ;;  %v267_v38 = vrot.slane %v258_v35, %v7586_v36  ;;  %v6134_v28 = vld [vmem:[%s8703_s5 + $0x30] sm:$0xff]   ;;  %v6136_v30 = vld [vmem:[%s8703_s5 + $0x28] sm:$0xff]   ;;  %v6138_v31 = vld [vmem:[%s8703_s5 + $0x20] sm:$0xff]  }
 0x11d   :  { %v271_v63 = vrot.slane %v258_v35, %v7591_v60  ;;  %v275_v1 = vrot.slane %v258_v35, %v7594_v61  ;;  %v6139_v32 = vld [vmem:[%s8703_s5 + $0x58] sm:$0xff]  }
 0x11e   :  { %v1323_v39 = vadd.f32 %v1322_v16, %v263_v37  ;;  %v1325_v40 = vadd.f32 %v1324_v18, %v267_v38  ;;  %v6140_v35 = vld [vmem:[%s8703_s5 + $0x18] sm:$0xff]   ;;  %v6141_v37 = vld [vmem:[%s8703_s5 + $0x50] sm:$0xff]  }
 0x11f   :  { %v6142_v38 = vld [vmem:[%s8703_s5 + $0x10] sm:$0xff]  }
 0x120   :  { %v1364_v41 = vadd.f32 %v1363_v17, %v1323_v39  ;;  %v1366_v43 = vadd.f32 %v1365_v19, %v1325_v40  ;;  %v6143_v39 = vld [vmem:[%s8703_s5 + $0x48] sm:$0xff]  }
 0x121   :  { %v6144_v40 = vld [vmem:[%s8703_s5 + $0x8] sm:$0xff]  }
 0x14a   :  { %v1404_v42 = vpop.f32.mrf.mxu0 }
 0x14b   :  { %v1405_v44 = vadd.f32 %v1404_v42, %v1364_v41  ;;  %v6145_v41 = vld [vmem:[%s8703_s5 + $0x40] sm:$0xff]  }
 0x14c   :  { %v1406_v45 = vpop.f32.mrf.mxu0  ;;  %v6146_v42 = vld [vmem:[%s8703_s5] sm:$0xff]  }
 0x14d   :  { %v1446_v46 = vadd.f32 %v1445_v27, %v1405_v44  ;;  %v1407_v47 = vadd.f32 %v1406_v45, %v1366_v43  ;;  %v6131_v27 = vld [vmem:[%s8703_s5 + $0x78] sm:$0xff]   ;;  %v6655_v44 = vmov 0.0   ;;  %v6148_v45 = vld [vmem:[%s8705_s7 + $0x30] sm:$0xff]  }
 0x14e   :  { %v1408_v48 = vpop.f32.mrf.mxu0  ;;  %5606 = vmatprep.subr.bf16.mxu0 %v6131_v27  ;;  %v6147_v43 = vld [vmem:[%s8705_s7 + $0x38] sm:$0xff]   ;;  %5690 = vmatprep.subr.bf16.mxu1 %v6655_v44 }
 0x14f   :  { %v1448_v49 = vadd.f32 %v1447_v14, %v1407_v47  ;;  %v1616_v50 = vmax.f32 %v1446_v46, 0.0  ;;  %v6132_v14 = vld [vmem:[%s8703_s5 + $0x38] sm:$0xff]   ;;  %v6149_v46 = vld [vmem:[%s8705_s7 + $0x28] sm:$0xff]   ;;  %v6150_v47 = vld [vmem:[%s8705_s7 + $0x20] sm:$0xff]  }
 0x150   :  { %v1409_v52 = vpop.f32.mrf.mxu0  ;;  %v6151_v48 = vld [vmem:[%s8705_s7 + $0x18] sm:$0xff]  }
 0x151   :  { %v1617_v53 = vmax.f32 %v1448_v49, 0.0  ;;  %v1620_v56 = vpack.c.bf16 %v1616_v50, %v1616_v50 }
 0x153   :  { %v1486_v54 = vpop.f32.mrf.mxu1  ;;  %v1621_v55 = vpack.c.bf16 %v1617_v53, %v1617_v53 }
 0x154   :  { %v1487_v3 = vadd.f32 %v1486_v54, %v271_v63  ;;  %v1688_v54 = vld [vmem:[%s8702_s4] sm:$0x3] }
 0x155   :  { %v1488_v57 = vpop.f32.mrf.mxu1  ;;  %2052 = vmatprep.mubr.bf16.mxu0 %v1621_v55  ;;  %v1693_v55 = vrot.slane %v1688_v54, %v7580_v34 }
 0x156   :  { %2053 = vmatmul.mubr.bf16.vlgmr.msra.gmra.mxu0 %v1620_v56  ;;  %v1489_v5 = vadd.f32 %v1488_v57, %v275_v1  ;;  %v1697_v56 = vrot.slane %v1688_v54, %v7586_v36  ;;  %v6189_v54 = vld [vmem:[%s8711_s13 + $0xe4] ss:$16 sps:$4 sm:$0xff]  }
 0x157   :  { %v1490_v58 = vpop.f32.mrf.mxu1  ;;  %5607 = vmatpush3.bf16.msra.mxu0 %v6132_v14 }
 0x158   :  { %5608 = vmatprep.subr.bf16.mxu0 %v6133_v51  ;;  %v6162_v51 = vld [vmem:[%s8707_s9] sm:$0xff]  }
 0x159   :  { %v1491_v59 = vpop.f32.mrf.mxu1 }
 0x15b   :  { %5609 = vmatpush3.bf16.msra.mxu0 %v6134_v28  ;;  %v6163_v28 = vld [vmem:[%s8709_s11 + $0x70] ss:$8 sps:$4 sm:$0xff]  }
 0x15c   :  { %5610 = vmatprep.subr.bf16.mxu0 %v6135_v29  ;;  %v6165_v29 = vld [vmem:[%s8709_s11 + $0x74] ss:$8 sps:$4 sm:$0xff]  }
 0x15f   :  { %5611 = vmatpush3.bf16.msra.mxu0 %v6136_v30  ;;  %v6168_v30 = vld [vmem:[%s8709_s11 + $0x64] ss:$8 sps:$4 sm:$0xff]  }
 0x160   :  { %5612 = vmatprep.subr.bf16.mxu0 %v6137_v6  ;;  %v6171_v6 = vld [vmem:[%s8709_s11 + $0x54] ss:$8 sps:$4 sm:$0xff]  }
 0x163   :  { %5613 = vmatpush3.bf16.msra.mxu0 %v6138_v31  ;;  %v6169_v31 = vld [vmem:[%s8709_s11 + $0x50] ss:$8 sps:$4 sm:$0xff]  }
 0x164   :  { %5614 = vmatprep.subr.bf16.mxu0 %v6139_v32  ;;  %v6174_v32 = vld [vmem:[%s8709_s11 + $0x44] ss:$8 sps:$4 sm:$0xff]  }
 0x167   :  { %5615 = vmatpush3.bf16.msra.mxu0 %v6140_v35  ;;  %v6172_v35 = vld [vmem:[%s8709_s11 + $0x40] ss:$8 sps:$4 sm:$0xff]  }
 0x168   :  { %5616 = vmatprep.subr.bf16.mxu0 %v6141_v37  ;;  %v6177_v37 = vld [vmem:[%s8709_s11 + $0x34] ss:$8 sps:$4 sm:$0xff]  }
 0x16b   :  { %5617 = vmatpush3.bf16.msra.mxu0 %v6142_v38  ;;  %v6175_v38 = vld [vmem:[%s8709_s11 + $0x30] ss:$8 sps:$4 sm:$0xff]  }
 0x16c   :  { %5618 = vmatprep.subr.bf16.mxu0 %v6143_v39  ;;  %v6180_v39 = vld [vmem:[%s8709_s11 + $0x24] ss:$8 sps:$4 sm:$0xff]  }
 0x16f   :  { %5619 = vmatpush3.bf16.msra.mxu0 %v6144_v40  ;;  %v6178_v40 = vld [vmem:[%s8709_s11 + $0x20] ss:$8 sps:$4 sm:$0xff]  }
 0x170   :  { %5620 = vmatprep.subr.bf16.mxu0 %v6145_v41  ;;  %v6183_v41 = vld [vmem:[%s8709_s11 + $0x14] ss:$8 sps:$4 sm:$0xff]  }
 0x173   :  { %5621 = vmatpush3.bf16.msra.mxu0 %v6146_v42  ;;  %v6181_v42 = vld [vmem:[%s8709_s11 + $0x10] ss:$8 sps:$4 sm:$0xff]  }
 0x174   :  { %5710 = vmatprep.subr.bf16.mxu0 %v6655_v44 }
 0x18a   :  { %v1527_v62 = vpop.f32.mrf.mxu0 }
 0x18b   :  { %v1528_v8 = vadd.f32 %v1527_v62, %v1487_v3 }
 0x18c   :  { %v1529_v0 = vpop.f32.mrf.mxu0 }
 0x18d   :  { %v1530_v11 = vadd.f32 %v1529_v0, %v1489_v5 }
 0x18e   :  { %v1531_v2 = vpop.f32.mrf.mxu0 }
 0x190   :  { %v1532_v4 = vpop.f32.mrf.mxu0 }
 0x192   :  { %v1609_v10 = vpop.f32.mrf.mxu0 }
 0x193   :  { %v1568_v9 = vpop.f32.mrf.mxu1 }
 0x194   :  { %v1569_v12 = vadd.f32 %v1568_v9, %v1528_v8  ;;  %v1611_v16 = vpop.f32.mrf.mxu0  ;;  %v6152_v9 = vld [vmem:[%s8705_s7 + $0x10] sm:$0xff]  }
 0x195   :  { %v1570_v15 = vpop.f32.mrf.mxu1 }
 0x196   :  { %v1610_v17 = vadd.f32 %v1609_v10, %v1569_v12  ;;  %v1571_v18 = vadd.f32 %v1570_v15, %v1530_v11  ;;  %v1613_v20 = vpop.f32.mrf.mxu0  ;;  %v6153_v10 = vld [vmem:[%s8705_s7 + $0x8] sm:$0xff]   ;;  %v6154_v11 = vld [vmem:[%s8705_s7] sm:$0xff]   ;;  %v6155_v12 = vld [vmem:[%s8707_s9 + $0x38] sm:$0xff]  }
 0x197   :  { %v1572_v19 = vpop.f32.mrf.mxu1  ;;  %v6156_v15 = vld [vmem:[%s8707_s9 + $0x30] sm:$0xff]   ;;  %v6161_v20 = vld [vmem:[%s8707_s9 + $0x8] sm:$0xff]  }
 0x198   :  { %v1612_v21 = vadd.f32 %v1611_v16, %v1571_v18  ;;  %v1618_v22 = vmax.f32 %v1610_v17, 0.0  ;;  %v1614_v24 = vpop.f32.mrf.mxu0  ;;  %v6157_v16 = vld [vmem:[%s8707_s9 + $0x28] sm:$0xff]   ;;  %v6158_v17 = vld [vmem:[%s8707_s9 + $0x20] sm:$0xff]   ;;  %v6159_v18 = vld [vmem:[%s8707_s9 + $0x18] sm:$0xff]  }
 0x199   :  { %v1573_v23 = vpop.f32.mrf.mxu1  ;;  %v6160_v19 = vld [vmem:[%s8707_s9 + $0x10] sm:$0xff]  }
 0x19a   :  { %v1619_v7 = vmax.f32 %v1612_v21, 0.0  ;;  %v1622_v26 = vpack.c.bf16 %v1618_v22, %v1618_v22  ;;  %v5260_v22 = vld [vmem:[%s8704_s6] ss:$0 sm:$0xff] }
 0x19c   :  { %v1623_v25 = vpack.c.bf16 %v1619_v7, %v1619_v7 }
 0x19e   :  { %2093 = vmatprep.mubr.bf16.mxu1 %v1623_v25 }
 0x19f   :  { %2094 = vmatmul.mubr.bf16.vlgmr.msra.gmra.mxu1 %v1622_v26 }
 0x1a0   :  { %5691 = vmatpush3.bf16.msra.mxu1 %v6147_v43  ;;  %5706 = vmatprep.mubr.msk.bf16.mxu1 %vm6656_vm1, %v6655_v44  ;;  %v5277_v43 = vld [vmem:[%s8706_s8] ss:$0 sm:$0xff] }
 0x1a1   :  { %5692 = vmatprep.subr.bf16.mxu1 %v6655_v44 }
 0x1a4   :  { %5693 = vmatpush3.bf16.msra.mxu1 %v6148_v45 }
 0x1a5   :  { %5694 = vmatprep.subr.bf16.mxu1 %v6655_v44 }
 0x1a8   :  { %5695 = vmatpush3.bf16.msra.mxu1 %v6149_v46 }
 0x1a9   :  { %5696 = vmatprep.subr.bf16.mxu1 %v6655_v44 }
 0x1ac   :  { %5697 = vmatpush3.bf16.msra.mxu1 %v6150_v47 }
 0x1ad   :  { %5698 = vmatprep.subr.bf16.mxu1 %v6655_v44 }
 0x1b0   :  { %5699 = vmatpush3.bf16.msra.mxu1 %v6151_v48 }
 0x1b1   :  { %5700 = vmatprep.subr.bf16.mxu1 %v6655_v44 }
 0x1b4   :  { %5701 = vmatpush3.bf16.msra.mxu1 %v6152_v9  ;;  %v6229_v9 = vld [vmem:[%s8711_s13] ss:$16 sps:$4 sm:$0xff]  }
 0x1b5   :  { %5702 = vmatprep.subr.bf16.mxu1 %v6655_v44 }
 0x1b8   :  { %5703 = vmatpush3.bf16.msra.mxu1 %v6153_v10  ;;  %v6237_v10 = vld [vmem:[%s8711_s13 + $0x1e4] ss:$16 sps:$4 sm:$0xff]  }
 0x1b9   :  { %5704 = vmatprep.subr.bf16.mxu1 %v6655_v44 }
 0x1bc   :  { %5705 = vmatpush3.bf16.msra.mxu1 %v6154_v11  ;;  %v6235_v11 = vld [vmem:[%s8711_s13 + $0x1e0] ss:$16 sps:$4 sm:$0xff]  }
 0x1bd   :  { %2616 = vmatprep.subr.bf16.mxu1 %v6165_v29  ;;  %v6198_v29 = vld [vmem:[%s8711_s13 + $0xcc] ss:$16 sps:$4 sm:$0xff]  }
 0x216   :  { %v2054_v49 = vpop.f32.mrf.mxu0 }
 0x217   :  { %v2055_v57 = vadd.f32 %v2054_v49, %v1693_v55  ;;  %v6192_v55 = vld [vmem:[%s8711_s13 + $0xec] ss:$16 sps:$4 sm:$0xff]  }
 0x218   :  { %v2056_v50 = vpop.f32.mrf.mxu0 }
 0x219   :  { %v2057_v59 = vadd.f32 %v2056_v50, %v1697_v56  ;;  %v6186_v50 = vld [vmem:[%s8709_s11 + $0x4] ss:$8 sps:$4 sm:$0xff]  }
 0x21a   :  { %v2058_v52 = vpop.f32.mrf.mxu0  ;;  %v6195_v56 = vld [vmem:[%s8711_s13 + $0xc4] ss:$16 sps:$4 sm:$0xff]  }
 0x21b   :  { %v6184_v52 = vld [vmem:[%s8709_s11] ss:$8 sps:$4 sm:$0xff]  }
 0x21c   :  { %v2059_v53 = vpop.f32.mrf.mxu0 }
 0x21d   :  { %v6187_v53 = vld [vmem:[%s8711_s13 + $0xe0] ss:$16 sps:$4 sm:$0xff]  }
 0x25f   :  { %v2095_v58 = vpop.f32.mrf.mxu1 }
 0x260   :  { %v2096_v62 = vadd.f32 %v2095_v58, %v2055_v57  ;;  %v6193_v57 = vld [vmem:[%s8711_s13 + $0xc0] ss:$16 sps:$4 sm:$0xff]   ;;  %v6201_v58 = vld [vmem:[%s8711_s13 + $0xa4] ss:$16 sps:$4 sm:$0xff]  }
 0x261   :  { %v2097_v63 = vpop.f32.mrf.mxu1 }
 0x262   :  { %v2098_v0 = vadd.f32 %v2097_v63, %v2057_v59  ;;  %v2102_v1 = vmax.f32 %v2096_v62, 0.0  ;;  %v6199_v59 = vld [vmem:[%s8711_s13 + $0xa0] ss:$16 sps:$4 sm:$0xff]   ;;  %v6207_v62 = vld [vmem:[%s8711_s13 + $0x84] ss:$16 sps:$4 sm:$0xff]  }
 0x263   :  { %v2099_v2 = vpop.f32.mrf.mxu1  ;;  %v6205_v63 = vld [vmem:[%s8711_s13 + $0x80] ss:$16 sps:$4 sm:$0xff]  }
 0x264   :  { %v2103_v3 = vmax.f32 %v2098_v0, 0.0  ;;  %v2104_v8 = vpack.c.bf16 %v2102_v1, %v2102_v1  ;;  %v6213_v0 = vld [vmem:[%s8711_s13 + $0x64] ss:$16 sps:$4 sm:$0xff]   ;;  %v6211_v1 = vld [vmem:[%s8711_s13 + $0x60] ss:$16 sps:$4 sm:$0xff]  }
 0x265   :  { %v2100_v4 = vpop.f32.mrf.mxu1  ;;  %v6219_v2 = vld [vmem:[%s8711_s13 + $0x44] ss:$16 sps:$4 sm:$0xff]  }
 0x266   :  { %v2105_v5 = vpack.c.bf16 %v2103_v3, %v2103_v3  ;;  %v6217_v3 = vld [vmem:[%s8711_s13 + $0x40] ss:$16 sps:$4 sm:$0xff]   ;;  %v6225_v4 = vld [vmem:[%s8711_s13 + $0x24] ss:$16 sps:$4 sm:$0xff]  }
 0x268   :  { %2273 = vmatprep.mubr.bf16.mxu0 %v2105_v5  ;;  %v6223_v5 = vld [vmem:[%s8711_s13 + $0x20] ss:$16 sps:$4 sm:$0xff]  }
 0x269   :  { %2274 = vmatmul.mubr.bf16.vlgmr.msra.gmra.mxu0 %v2104_v8  ;;  %v6231_v8 = vld [vmem:[%s8711_s13 + $0x4] ss:$16 sps:$4 sm:$0xff]  }
 0x26a   :  { %5726 = vmatprep.mubr.msk.bf16.mxu0 %vm6656_vm1, %v6655_v44  ;;  %5711 = vmatpush3.bf16.msra.mxu0 %v6155_v12  ;;  %v6243_v12 = vld [vmem:[%s8711_s13 + $0x1c4] ss:$16 sps:$4 sm:$0xff]  }
 0x26b   :  { %5712 = vmatprep.subr.bf16.mxu0 %v6655_v44 }
 0x26e   :  { %5713 = vmatpush3.bf16.msra.mxu0 %v6156_v15  ;;  %v6241_v15 = vld [vmem:[%s8711_s13 + $0x1c0] ss:$16 sps:$4 sm:$0xff]  }
 0x26f   :  { %5714 = vmatprep.subr.bf16.mxu0 %v6655_v44 }
 0x272   :  { %5715 = vmatpush3.bf16.msra.mxu0 %v6157_v16  ;;  %v6249_v16 = vld [vmem:[%s8711_s13 + $0x1a4] ss:$16 sps:$4 sm:$0xff]  }
 0x273   :  { %5716 = vmatprep.subr.bf16.mxu0 %v6655_v44 }
 0x276   :  { %5717 = vmatpush3.bf16.msra.mxu0 %v6158_v17  ;;  %v6247_v17 = vld [vmem:[%s8711_s13 + $0x1a0] ss:$16 sps:$4 sm:$0xff]  }
 0x277   :  { %5718 = vmatprep.subr.bf16.mxu0 %v6655_v44 }
 0x27a   :  { %5719 = vmatpush3.bf16.msra.mxu0 %v6159_v18  ;;  %v6255_v18 = vld [vmem:[%s8711_s13 + $0x184] ss:$16 sps:$4 sm:$0xff]  }
 0x27b   :  { %5720 = vmatprep.subr.bf16.mxu0 %v6655_v44 }
 0x27e   :  { %5721 = vmatpush3.bf16.msra.mxu0 %v6160_v19  ;;  %v6253_v19 = vld [vmem:[%s8711_s13 + $0x180] ss:$16 sps:$4 sm:$0xff]  }
 0x27f   :  { %5722 = vmatprep.subr.bf16.mxu0 %v6655_v44 }
 0x282   :  { %5723 = vmatpush3.bf16.msra.mxu0 %v6161_v20  ;;  %v6261_v20 = vld [vmem:[%s8711_s13 + $0x164] ss:$16 sps:$4 sm:$0xff]  }
 0x283   :  { %5724 = vmatprep.subr.bf16.mxu0 %v6655_v44 }
 0x286   :  { %5725 = vmatpush3.bf16.msra.mxu0 %v6162_v51  ;;  %v6190_v51 = vld [vmem:[%s8711_s13 + $0xe8] ss:$16 sps:$4 sm:$0xff]  }
 0x287   :  { %3067 = vmatprep.subr.bf16.mxu0 %v6189_v54  ;;  %v6264_v54 = vld [vmem:[%s8711_s13 + $0x16c] ss:$16 sps:$4 sm:$0xff]  }
 0x329   :  { %v5622_v21 = vpop.f32.mrf.mxu0 }
 0x32b   :  { %v5623_v23 = vpop.f32.mrf.mxu0 }
 0x32c   :  { %v5624_v24 = vadd.f32 %v5623_v23, %v5622_v21  ;;  %v6259_v21 = vld [vmem:[%s8711_s13 + $0x160] ss:$16 sps:$4 sm:$0xff]  }
 0x32d   :  { %v5625_v7 = vpop.f32.mrf.mxu0  ;;  %v6265_v23 = vld [vmem:[%s8711_s13 + $0x140] ss:$16 sps:$4 sm:$0xff]  }
 0x32e   :  { %v2276_v25 = vadd.f32 %v5624_v24, %v5260_v22  ;;  %v6267_v22 = vld [vmem:[%s8711_s13 + $0x144] ss:$16 sps:$4 sm:$0xff]   ;;  %v5286_v24 = vld [vmem:[%s8708_s10] ss:$0 sm:$0xff] }
 0x32f   :  { %v5626_v26 = vpop.f32.mrf.mxu0 }
 0x330   :  { %v2281_v27 = vmax.f32 %v2276_v25, 0.0 }
 0x332   :  { %v2282_v14 = vpack.c.bf16 %v2281_v27, %v2281_v27 }
 0x334   :  { %5707 = vmatmul.mubr.bf16.vlgmr.msra.gmra.mxu1 %v2282_v14 }
 0x335   :  { %2648 = vmatprep.mubr.bf16.mxu1 %v6654_v13  ;;  %2617 = vmatpush1.bf16.msra.mxu1 %v6163_v28  ;;  %v6166_v13 = vld [vmem:[%s8709_s11 + $0x60] ss:$8 sps:$4 sm:$0xff]  }
 0x336   :  { %2618 = vmatprep.subr.bf16.mxu1 %v6168_v30 }
 0x339   :  { %2619 = vmatpush1.bf16.msra.mxu1 %v6166_v13  ;;  %v6196_v13 = vld [vmem:[%s8711_s13 + $0xc8] ss:$16 sps:$4 sm:$0xff]  }
 0x33a   :  { %2620 = vmatprep.subr.bf16.mxu1 %v6171_v6  ;;  %v6204_v6 = vld [vmem:[%s8711_s13 + $0xac] ss:$16 sps:$4 sm:$0xff]  }
 0x33d   :  { %2621 = vmatpush1.bf16.msra.mxu1 %v6169_v31  ;;  %v6202_v31 = vld [vmem:[%s8711_s13 + $0xa8] ss:$16 sps:$4 sm:$0xff]  }
 0x33e   :  { %2622 = vmatprep.subr.bf16.mxu1 %v6174_v32  ;;  %v6210_v32 = vld [vmem:[%s8711_s13 + $0x8c] ss:$16 sps:$4 sm:$0xff]  }
 0x341   :  { %2623 = vmatpush1.bf16.msra.mxu1 %v6172_v35  ;;  %v6208_v35 = vld [vmem:[%s8711_s13 + $0x88] ss:$16 sps:$4 sm:$0xff]  }
 0x342   :  { %2624 = vmatprep.subr.bf16.mxu1 %v6177_v37  ;;  %v6216_v37 = vld [vmem:[%s8711_s13 + $0x6c] ss:$16 sps:$4 sm:$0xff]  }
 0x345   :  { %2625 = vmatpush1.bf16.msra.mxu1 %v6175_v38  ;;  %v6214_v38 = vld [vmem:[%s8711_s13 + $0x68] ss:$16 sps:$4 sm:$0xff]  }
 0x346   :  { %2626 = vmatprep.subr.bf16.mxu1 %v6180_v39  ;;  %v6222_v39 = vld [vmem:[%s8711_s13 + $0x4c] ss:$16 sps:$4 sm:$0xff]  }
 0x349   :  { %2627 = vmatpush1.bf16.msra.mxu1 %v6178_v40  ;;  %v6220_v40 = vld [vmem:[%s8711_s13 + $0x48] ss:$16 sps:$4 sm:$0xff]  }
 0x34a   :  { %2628 = vmatprep.subr.bf16.mxu1 %v6183_v41  ;;  %v6228_v41 = vld [vmem:[%s8711_s13 + $0x2c] ss:$16 sps:$4 sm:$0xff]  }
 0x34d   :  { %2629 = vmatpush1.bf16.msra.mxu1 %v6181_v42  ;;  %v6226_v42 = vld [vmem:[%s8711_s13 + $0x28] ss:$16 sps:$4 sm:$0xff]  }
 0x34e   :  { %2630 = vmatprep.subr.bf16.mxu1 %v6186_v50  ;;  %v6250_v50 = vld [vmem:[%s8711_s13 + $0x1a8] ss:$16 sps:$4 sm:$0xff]  }
 0x351   :  { %2631 = vmatpush1.bf16.msra.mxu1 %v6184_v52  ;;  %v6258_v52 = vld [vmem:[%s8711_s13 + $0x18c] ss:$16 sps:$4 sm:$0xff]  }
 0x352   :  { %3108 = vmatprep.subr.bf16.mxu1 %v6192_v55  ;;  %v6262_v55 = vld [vmem:[%s8711_s13 + $0x168] ss:$16 sps:$4 sm:$0xff]  }
 0x3f4   :  { %v2388_v44 = vpop.f32.mrf.mxu1 }
 0x3f5   :  { %v2389_v45 = vadd.f32 %v5277_v43, %v2388_v44  ;;  %v6234_v43 = vld [vmem:[%s8711_s13 + $0xc] ss:$16 sps:$4 sm:$0xff]   ;;  %v6232_v44 = vld [vmem:[%s8711_s13 + $0x8] ss:$16 sps:$4 sm:$0xff]  }
 0x3f6   :  { %v5708_v46 = vpop.f32.mrf.mxu1 }
 0x3f7   :  { %v2394_v47 = vpack.c.bf16 %v2389_v45, %v2389_v45  ;;  %v6240_v45 = vld [vmem:[%s8711_s13 + $0x1ec] ss:$16 sps:$4 sm:$0xff]   ;;  %v6238_v46 = vld [vmem:[%s8711_s13 + $0x1e8] ss:$16 sps:$4 sm:$0xff]  }
 0x3f8   :  { %v2391_v48 = vpop.f32.mrf.mxu1 }
 0x3f9   :  { %5727 = vmatmul.mubr.bf16.vlgmr.msra.gmra.mxu0 %v2394_v47  ;;  %v6246_v47 = vld [vmem:[%s8711_s13 + $0x1cc] ss:$16 sps:$4 sm:$0xff]   ;;  %v6244_v48 = vld [vmem:[%s8711_s13 + $0x1c8] ss:$16 sps:$4 sm:$0xff]  }
 0x3fa   :  { %v5709_v49 = vpop.f32.mrf.mxu1  ;;  %3068 = vmatpush1.bf16.msra.mxu0 %v6187_v53  ;;  %v6256_v53 = vld [vmem:[%s8711_s13 + $0x188] ss:$16 sps:$4 sm:$0xff]  }
 0x3fb   :  { %3069 = vmatprep.subr.bf16.mxu0 %v6195_v56  ;;  %v6252_v49 = vld [vmem:[%s8711_s13 + $0x1ac] ss:$16 sps:$4 sm:$0xff]  }
 0x3fc   :  { %v6270_v56 = vld [vmem:[%s8711_s13 + $0x14c] ss:$16 sps:$4 sm:$0xff]  }
 0x3fe   :  { %3070 = vmatpush1.bf16.msra.mxu0 %v6193_v57  ;;  %v6268_v57 = vld [vmem:[%s8711_s13 + $0x148] ss:$16 sps:$4 sm:$0xff]  }
 0x3ff   :  { %3071 = vmatprep.subr.bf16.mxu0 %v6201_v58  ;;  %v6273_v58 = vld [vmem:[%s8711_s13 + $0x124] ss:$16 sps:$4 sm:$0xff]  }
 0x402   :  { %3072 = vmatpush1.bf16.msra.mxu0 %v6199_v59  ;;  %v6276_v59 = vld [vmem:[%s8711_s13 + $0x12c] ss:$16 sps:$4 sm:$0xff]  }
 0x403   :  { %3073 = vmatprep.subr.bf16.mxu0 %v6207_v62  ;;  %v6271_v62 = vld [vmem:[%s8711_s13 + $0x120] ss:$16 sps:$4 sm:$0xff]  }
 0x406   :  { %3074 = vmatpush1.bf16.msra.mxu0 %v6205_v63  ;;  %v6274_v63 = vld [vmem:[%s8711_s13 + $0x128] ss:$16 sps:$4 sm:$0xff]  }
 0x407   :  { %3075 = vmatprep.subr.bf16.mxu0 %v6213_v0  ;;  %v6279_v0 = vld [vmem:[%s8711_s13 + $0x104] ss:$16 sps:$4 sm:$0xff]  }
 0x40a   :  { %3076 = vmatpush1.bf16.msra.mxu0 %v6211_v1  ;;  %v6282_v1 = vld [vmem:[%s8711_s13 + $0x10c] ss:$16 sps:$4 sm:$0xff]  }
 0x40b   :  { %3077 = vmatprep.subr.bf16.mxu0 %v6219_v2  ;;  %v6277_v2 = vld [vmem:[%s8711_s13 + $0x100] ss:$16 sps:$4 sm:$0xff]  }
 0x40e   :  { %3078 = vmatpush1.bf16.msra.mxu0 %v6217_v3  ;;  %v6280_v3 = vld [vmem:[%s8711_s13 + $0x108] ss:$16 sps:$4 sm:$0xff]  }
 0x40f   :  { %3079 = vmatprep.subr.bf16.mxu0 %v6225_v4  ;;  %v6285_v4 = vld [vmem:[%s8713_s15 + $0x18c] ss:$28 sps:$4 sm:$0xff]  }
 0x412   :  { %3080 = vmatpush1.bf16.msra.mxu0 %v6223_v5  ;;  %v6288_v5 = vld [vmem:[%s8713_s15 + $0x50c] ss:$28 sps:$4 sm:$0xff]  }
 0x413   :  { %3081 = vmatprep.subr.bf16.mxu0 %v6231_v8  ;;  %v2524_v8 = vld [vmem:[%s8710_s12] sm:$0x3] }
 0x416   :  { %3082 = vmatpush1.bf16.msra.mxu0 %v6229_v9  ;;  %v2529_v9 = vrot.slane %v2524_v8, %v7580_v34 }
 0x417   :  { %3083 = vmatprep.subr.bf16.mxu0 %v6237_v10  ;;  %v2533_v10 = vrot.slane %v2524_v8, %v7586_v36  ;;  %v6357_v8 = vld [vmem:[%s8713_s15 + $0x26c] ss:$28 sps:$4 sm:$0xff]  }
 0x41a   :  { %3084 = vmatpush2.bf16.msra.mxu0 %v6235_v11 }
 0x41b   :  { %3085 = vmatprep.subr.bf16.mxu0 %v6243_v12 }
 0x41e   :  { %3086 = vmatpush2.bf16.msra.mxu0 %v6241_v15 }
 0x41f   :  { %3087 = vmatprep.subr.bf16.mxu0 %v6249_v16 }
 0x422   :  { %3088 = vmatpush2.bf16.msra.mxu0 %v6247_v17 }
 0x423   :  { %3089 = vmatprep.subr.bf16.mxu0 %v6255_v18 }
 0x426   :  { %3090 = vmatpush2.bf16.msra.mxu0 %v6253_v19 }
 0x427   :  { %3091 = vmatprep.subr.bf16.mxu0 %v6261_v20 }
 0x42a   :  { %3092 = vmatpush2.bf16.msra.mxu0 %v6259_v21 }
 0x42b   :  { %3093 = vmatprep.subr.bf16.mxu0 %v6267_v22  ;;  %v6283_v22 = vld [vmem:[%s8713_s15 + $0x188] ss:$28 sps:$4 sm:$0xff]  }
 0x42e   :  { %3094 = vmatpush2.bf16.msra.mxu0 %v6265_v23  ;;  %v6286_v23 = vld [vmem:[%s8713_s15 + $0x508] ss:$28 sps:$4 sm:$0xff]  }
 0x42f   :  { %3095 = vmatprep.subr.bf16.mxu0 %v6273_v58  ;;  %v6337_v58 = vld [vmem:[%s8713_s15 + $0x310] ss:$28 sps:$4 sm:$0xff]  }
 0x432   :  { %3096 = vmatpush2.bf16.msra.mxu0 %v6271_v62  ;;  %v6345_v62 = vld [vmem:[%s8713_s15 + $0x2dc] ss:$28 sps:$4 sm:$0xff]  }
 0x433   :  { %3097 = vmatprep.subr.bf16.mxu0 %v6279_v0  ;;  %v6343_v0 = vld [vmem:[%s8713_s15 + $0x2d8] ss:$28 sps:$4 sm:$0xff]  }
 0x436   :  { %3098 = vmatpush2.bf16.msra.mxu0 %v6277_v2  ;;  %v6351_v2 = vld [vmem:[%s8713_s15 + $0x2a4] ss:$28 sps:$4 sm:$0xff]  }
 0x437   :  { %4602 = vmatprep.subr.bf16.mxu0 %v6285_v4  ;;  %v6349_v4 = vld [vmem:[%s8713_s15 + $0x2a0] ss:$28 sps:$4 sm:$0xff]  }
 0x4b9   :  { %v2500_v7 = vpop.f32.mrf.mxu0 }
 0x4ba   :  { %v2501_v25 = vadd.f32 %v5286_v24, %v2500_v7  ;;  %v6291_v7 = vld [vmem:[%s8713_s15 + $0x154] ss:$28 sps:$4 sm:$0xff]  }
 0x4bb   :  { %v5728_v26 = vpop.f32.mrf.mxu0 }
 0x4bc   :  { %v2506_v27 = vmax.f32 %v2501_v25, 0.0  ;;  %v6294_v25 = vld [vmem:[%s8713_s15 + $0x4d4] ss:$28 sps:$4 sm:$0xff]  }
 0x4bd   :  { %v2503_v14 = vpop.f32.mrf.mxu0  ;;  %v6289_v26 = vld [vmem:[%s8713_s15 + $0x150] ss:$28 sps:$4 sm:$0xff]  }
 0x4be   :  { %v2507_v28 = vpack.c.bf16 %v2506_v27, %v2506_v27  ;;  %v6292_v27 = vld [vmem:[%s8713_s15 + $0x4d0] ss:$28 sps:$4 sm:$0xff]   ;;  %v6297_v14 = vld [vmem:[%s8713_s15 + $0x11c] ss:$28 sps:$4 sm:$0xff]  }
 0x4bf   :  { %v5729_v30 = vpop.f32.mrf.mxu0 }
 0x4c0   :  { %2649 = vmatmul.mubr.bf16.vlgmr.msra.gmra.mxu1 %v2507_v28  ;;  %v6295_v28 = vld [vmem:[%s8713_s15 + $0x118] ss:$28 sps:$4 sm:$0xff]   ;;  %v6303_v30 = vld [vmem:[%s8713_s15 + $0xe4] ss:$28 sps:$4 sm:$0xff]  }
 0x4c1   :  { %3109 = vmatpush1.bf16.msra.mxu1 %v6190_v51  ;;  %v6300_v51 = vld [vmem:[%s8713_s15 + $0x49c] ss:$28 sps:$4 sm:$0xff]  }
 0x4c2   :  { %3110 = vmatprep.subr.bf16.mxu1 %v6198_v29  ;;  %v6298_v29 = vld [vmem:[%s8713_s15 + $0x498] ss:$28 sps:$4 sm:$0xff]  }
 0x4c5   :  { %3111 = vmatpush1.bf16.msra.mxu1 %v6196_v13  ;;  %v6306_v13 = vld [vmem:[%s8713_s15 + $0x464] ss:$28 sps:$4 sm:$0xff]  }
 0x4c6   :  { %3112 = vmatprep.subr.bf16.mxu1 %v6204_v6  ;;  %v6301_v6 = vld [vmem:[%s8713_s15 + $0xe0] ss:$28 sps:$4 sm:$0xff]  }
 0x4c9   :  { %3113 = vmatpush1.bf16.msra.mxu1 %v6202_v31  ;;  %v6304_v31 = vld [vmem:[%s8713_s15 + $0x460] ss:$28 sps:$4 sm:$0xff]  }
 0x4ca   :  { %3114 = vmatprep.subr.bf16.mxu1 %v6210_v32  ;;  %v6309_v32 = vld [vmem:[%s8713_s15 + $0xac] ss:$28 sps:$4 sm:$0xff]  }
 0x4cd   :  { %3115 = vmatpush1.bf16.msra.mxu1 %v6208_v35  ;;  %v6312_v35 = vld [vmem:[%s8713_s15 + $0x42c] ss:$28 sps:$4 sm:$0xff]  }
 0x4ce   :  { %3116 = vmatprep.subr.bf16.mxu1 %v6216_v37  ;;  %v6307_v37 = vld [vmem:[%s8713_s15 + $0xa8] ss:$28 sps:$4 sm:$0xff]  }
 0x4d1   :  { %3117 = vmatpush1.bf16.msra.mxu1 %v6214_v38  ;;  %v6310_v38 = vld [vmem:[%s8713_s15 + $0x428] ss:$28 sps:$4 sm:$0xff]  }
 0x4d2   :  { %3118 = vmatprep.subr.bf16.mxu1 %v6222_v39  ;;  %v6315_v39 = vld [vmem:[%s8713_s15 + $0x74] ss:$28 sps:$4 sm:$0xff]  }
 0x4d5   :  { %3119 = vmatpush1.bf16.msra.mxu1 %v6220_v40  ;;  %v6318_v40 = vld [vmem:[%s8713_s15 + $0x3f4] ss:$28 sps:$4 sm:$0xff]  }
 0x4d6   :  { %3120 = vmatprep.subr.bf16.mxu1 %v6228_v41  ;;  %v6313_v41 = vld [vmem:[%s8713_s15 + $0x70] ss:$28 sps:$4 sm:$0xff]  }
 0x4d9   :  { %3121 = vmatpush1.bf16.msra.mxu1 %v6226_v42  ;;  %v6316_v42 = vld [vmem:[%s8713_s15 + $0x3f0] ss:$28 sps:$4 sm:$0xff]  }
 0x4da   :  { %3122 = vmatprep.subr.bf16.mxu1 %v6234_v43  ;;  %v6321_v43 = vld [vmem:[%s8713_s15 + $0x3c] ss:$28 sps:$4 sm:$0xff]  }
 0x4dd   :  { %3123 = vmatpush1.bf16.msra.mxu1 %v6232_v44  ;;  %v6324_v44 = vld [vmem:[%s8713_s15 + $0x3bc] ss:$28 sps:$4 sm:$0xff]  }
 0x4de   :  { %3124 = vmatprep.subr.bf16.mxu1 %v6240_v45  ;;  %v6319_v45 = vld [vmem:[%s8713_s15 + $0x38] ss:$28 sps:$4 sm:$0xff]  }
 0x4e1   :  { %3125 = vmatpush2.bf16.msra.mxu1 %v6238_v46  ;;  %v6322_v46 = vld [vmem:[%s8713_s15 + $0x3b8] ss:$28 sps:$4 sm:$0xff]  }
 0x4e2   :  { %3126 = vmatprep.subr.bf16.mxu1 %v6246_v47  ;;  %v6327_v47 = vld [vmem:[%s8713_s15 + $0x4] ss:$28 sps:$4 sm:$0xff]  }
 0x4e5   :  { %3127 = vmatpush2.bf16.msra.mxu1 %v6244_v48  ;;  %v6330_v48 = vld [vmem:[%s8713_s15 + $0x384] ss:$28 sps:$4 sm:$0xff]  }
 0x4e6   :  { %3128 = vmatprep.subr.bf16.mxu1 %v6252_v49  ;;  %v6325_v49 = vld [vmem:[%s8713_s15] ss:$28 sps:$4 sm:$0xff]  }
 0x4e9   :  { %3129 = vmatpush2.bf16.msra.mxu1 %v6250_v50  ;;  %v6328_v50 = vld [vmem:[%s8713_s15 + $0x380] ss:$28 sps:$4 sm:$0xff]  }
 0x4ea   :  { %3130 = vmatprep.subr.bf16.mxu1 %v6258_v52  ;;  %v6333_v52 = vld [vmem:[%s8713_s15 + $0x34c] ss:$28 sps:$4 sm:$0xff]  }
 0x4ed   :  { %3131 = vmatpush2.bf16.msra.mxu1 %v6256_v53  ;;  %v6336_v53 = vld [vmem:[%s8713_s15 + $0x6cc] ss:$28 sps:$4 sm:$0xff]  }
 0x4ee   :  { %3132 = vmatprep.subr.bf16.mxu1 %v6264_v54  ;;  %v6331_v54 = vld [vmem:[%s8713_s15 + $0x348] ss:$28 sps:$4 sm:$0xff]  }
 0x4f1   :  { %3133 = vmatpush2.bf16.msra.mxu1 %v6262_v55  ;;  %v6334_v55 = vld [vmem:[%s8713_s15 + $0x6c8] ss:$28 sps:$4 sm:$0xff]  }
 0x4f2   :  { %3134 = vmatprep.subr.bf16.mxu1 %v6270_v56  ;;  %v6339_v56 = vld [vmem:[%s8713_s15 + $0x314] ss:$28 sps:$4 sm:$0xff]  }
 0x4f5   :  { %3135 = vmatpush2.bf16.msra.mxu1 %v6268_v57  ;;  %v6342_v57 = vld [vmem:[%s8713_s15 + $0x694] ss:$28 sps:$4 sm:$0xff]  }
 0x4f6   :  { %3136 = vmatprep.subr.bf16.mxu1 %v6276_v59  ;;  %v6340_v59 = vld [vmem:[%s8713_s15 + $0x690] ss:$28 sps:$4 sm:$0xff]  }
 0x4f9   :  { %3137 = vmatpush2.bf16.msra.mxu1 %v6274_v63  ;;  %v6348_v63 = vld [vmem:[%s8713_s15 + $0x65c] ss:$28 sps:$4 sm:$0xff]  }
 0x4fa   :  { %3138 = vmatprep.subr.bf16.mxu1 %v6282_v1  ;;  %v6346_v1 = vld [vmem:[%s8713_s15 + $0x658] ss:$28 sps:$4 sm:$0xff]  }
 0x4fd   :  { %3139 = vmatpush2.bf16.msra.mxu1 %v6280_v3  ;;  %v6354_v3 = vld [vmem:[%s8713_s15 + $0x624] ss:$28 sps:$4 sm:$0xff]  }
 0x4fe   :  { %4643 = vmatprep.subr.bf16.mxu1 %v6288_v5  ;;  %v6352_v5 = vld [vmem:[%s8713_s15 + $0x620] ss:$28 sps:$4 sm:$0xff]  }
 0x580   :  { %v2650_v11 = vpop.f32.mrf.mxu1 }
 0x581   :  { %v2651_v12 = vadd.f32 %v2650_v11, %v2529_v9  ;;  %v6360_v9 = vld [vmem:[%s8713_s15 + $0x5ec] ss:$28 sps:$4 sm:$0xff]  }
 0x582   :  { %v2652_v15 = vpop.f32.mrf.mxu1  ;;  %v6358_v11 = vld [vmem:[%s8713_s15 + $0x5e8] ss:$28 sps:$4 sm:$0xff]  }
 0x583   :  { %v2653_v16 = vadd.f32 %v2652_v15, %v2533_v10  ;;  %v2657_v17 = vmax.f32 %v2651_v12, 0.0  ;;  %v6355_v10 = vld [vmem:[%s8713_s15 + $0x268] ss:$28 sps:$4 sm:$0xff]   ;;  %v6363_v12 = vld [vmem:[%s8713_s15 + $0x234] ss:$28 sps:$4 sm:$0xff]  }
 0x584   :  { %v2654_v18 = vpop.f32.mrf.mxu1  ;;  %v6366_v15 = vld [vmem:[%s8713_s15 + $0x5b4] ss:$28 sps:$4 sm:$0xff]  }
 0x585   :  { %v2658_v19 = vmax.f32 %v2653_v16, 0.0  ;;  %v2659_v24 = vpack.c.bf16 %v2657_v17, %v2657_v17  ;;  %v6361_v16 = vld [vmem:[%s8713_s15 + $0x230] ss:$28 sps:$4 sm:$0xff]   ;;  %v6369_v18 = vld [vmem:[%s8713_s15 + $0x1fc] ss:$28 sps:$4 sm:$0xff]  }
 0x586   :  { %v2655_v20 = vpop.f32.mrf.mxu1  ;;  %v6364_v17 = vld [vmem:[%s8713_s15 + $0x5b0] ss:$28 sps:$4 sm:$0xff]  }
 0x587   :  { %v2660_v21 = vpack.c.bf16 %v2658_v19, %v2658_v19  ;;  %v6372_v19 = vld [vmem:[%s8713_s15 + $0x57c] ss:$28 sps:$4 sm:$0xff]  }
 0x588   :  { %v6367_v20 = vld [vmem:[%s8713_s15 + $0x1f8] ss:$28 sps:$4 sm:$0xff]  }
 0x589   :  { %3099 = vmatprep.mubr.bf16.mxu0 %v2660_v21  ;;  %3140 = vmatprep.mubr.bf16.mxu1 %v2660_v21  ;;  %v6370_v21 = vld [vmem:[%s8713_s15 + $0x578] ss:$28 sps:$4 sm:$0xff]  }
 0x58a   :  { %3100 = vmatmul.mubr.bf16.vlgmr.msra.gmra.mxu0 %v2659_v24  ;;  %3141 = vmatmul.mubr.bf16.vlgmr.msra.gmra.mxu1 %v2659_v24  ;;  %v6373_v24 = vld [vmem:[%s8713_s15 + $0x1c0] ss:$28 sps:$4 sm:$0xff]  }
 0x58b   :  { %4603 = vmatpush1.bf16.msra.mxu0 %v6283_v22  ;;  %4644 = vmatpush1.bf16.msra.mxu1 %v6286_v23  ;;  %v6375_v22 = vld [vmem:[%s8713_s15 + $0x1c4] ss:$28 sps:$4 sm:$0xff]  }
 0x58c   :  { %4604 = vmatprep.subr.bf16.mxu0 %v6291_v7  ;;  %4645 = vmatprep.subr.bf16.mxu1 %v6294_v25  ;;  %v6378_v23 = vld [vmem:[%s8713_s15 + $0x544] ss:$28 sps:$4 sm:$0xff]   ;;  %v6381_v25 = vld [vmem:[%s8713_s15 + $0x194] ss:$28 sps:$4 sm:$0xff]  }
 0x58d   :  { %v6376_v7 = vld [vmem:[%s8713_s15 + $0x540] ss:$28 sps:$4 sm:$0xff]  }
 0x58f   :  { %4605 = vmatpush1.bf16.msra.mxu0 %v6289_v26  ;;  %4646 = vmatpush1.bf16.msra.mxu1 %v6292_v27  ;;  %v6384_v26 = vld [vmem:[%s8713_s15 + $0x514] ss:$28 sps:$4 sm:$0xff]   ;;  %v2725_v27 = vld [vmem:[%s8712_s14] sm:$0xf] }
 0x590   :  { %4606 = vmatprep.subr.bf16.mxu0 %v6297_v14  ;;  %4647 = vmatprep.subr.bf16.mxu1 %v6300_v51  ;;  %v2730_v14 = vrot.slane %v2725_v27, %v7580_v34  ;;  %v2738_v51 = vrot.slane %v2725_v27, %v7591_v60 }
 0x593   :  { %4607 = vmatpush1.bf16.msra.mxu0 %v6295_v28  ;;  %4648 = vmatpush1.bf16.msra.mxu1 %v6298_v29  ;;  %v2734_v28 = vrot.slane %v2725_v27, %v7586_v36  ;;  %v2742_v29 = vrot.slane %v2725_v27, %v7594_v61  ;;  %v6435_v27 = vld [vmem:[%s8713_s15 + $0x31c] ss:$28 sps:$4 sm:$0xff]  }
 0x594   :  { %4608 = vmatprep.subr.bf16.mxu0 %v6303_v30  ;;  %4649 = vmatprep.subr.bf16.mxu1 %v6306_v13 }
 0x597   :  { %4609 = vmatpush1.bf16.msra.mxu0 %v6301_v6  ;;  %4650 = vmatpush1.bf16.msra.mxu1 %v6304_v31 }
 0x598   :  { %4610 = vmatprep.subr.bf16.mxu0 %v6309_v32  ;;  %4651 = vmatprep.subr.bf16.mxu1 %v6312_v35 }
 0x59b   :  { %4611 = vmatpush1.bf16.msra.mxu0 %v6307_v37  ;;  %4652 = vmatpush1.bf16.msra.mxu1 %v6310_v38 }
 0x59c   :  { %4612 = vmatprep.subr.bf16.mxu0 %v6315_v39  ;;  %4653 = vmatprep.subr.bf16.mxu1 %v6318_v40 }
 0x59f   :  { %4613 = vmatpush1.bf16.msra.mxu0 %v6313_v41  ;;  %4654 = vmatpush1.bf16.msra.mxu1 %v6316_v42 }
 0x5a0   :  { %4614 = vmatprep.subr.bf16.mxu0 %v6321_v43  ;;  %4655 = vmatprep.subr.bf16.mxu1 %v6324_v44 }
 0x5a3   :  { %4615 = vmatpush1.bf16.msra.mxu0 %v6319_v45  ;;  %4656 = vmatpush1.bf16.msra.mxu1 %v6322_v46 }
 0x5a4   :  { %4616 = vmatprep.subr.bf16.mxu0 %v6327_v47  ;;  %4657 = vmatprep.subr.bf16.mxu1 %v6330_v48 }
 0x5a7   :  { %4617 = vmatpush1.bf16.msra.mxu0 %v6325_v49  ;;  %4658 = vmatpush1.bf16.msra.mxu1 %v6328_v50  ;;  %v6379_v49 = vld [vmem:[%s8713_s15 + $0x190] ss:$28 sps:$4 sm:$0xff]  }
 0x5a8   :  { %4618 = vmatprep.subr.bf16.mxu0 %v6333_v52  ;;  %4659 = vmatprep.subr.bf16.mxu1 %v6336_v53  ;;  %v6382_v50 = vld [vmem:[%s8713_s15 + $0x510] ss:$28 sps:$4 sm:$0xff]  }
 0x5ab   :  { %4619 = vmatpush2.bf16.msra.mxu0 %v6331_v54  ;;  %4660 = vmatpush2.bf16.msra.mxu1 %v6334_v55  ;;  %v6387_v54 = vld [vmem:[%s8713_s15 + $0x15c] ss:$28 sps:$4 sm:$0xff]  }
 0x5ac   :  { %4620 = vmatprep.subr.bf16.mxu0 %v6339_v56  ;;  %4661 = vmatprep.subr.bf16.mxu1 %v6342_v57  ;;  %v6390_v55 = vld [vmem:[%s8713_s15 + $0x4dc] ss:$28 sps:$4 sm:$0xff]  }
 0x5ad   :  { %v6385_v56 = vld [vmem:[%s8713_s15 + $0x158] ss:$28 sps:$4 sm:$0xff]  }
 0x5ae   :  { %v6388_v57 = vld [vmem:[%s8713_s15 + $0x4d8] ss:$28 sps:$4 sm:$0xff]  }
 0x5af   :  { %4621 = vmatpush2.bf16.msra.mxu0 %v6337_v58  ;;  %4662 = vmatpush2.bf16.msra.mxu1 %v6340_v59  ;;  %v6393_v58 = vld [vmem:[%s8713_s15 + $0x124] ss:$28 sps:$4 sm:$0xff]  }
 0x5b0   :  { %4622 = vmatprep.subr.bf16.mxu0 %v6345_v62  ;;  %4663 = vmatprep.subr.bf16.mxu1 %v6348_v63  ;;  %v6396_v59 = vld [vmem:[%s8713_s15 + $0x4a4] ss:$28 sps:$4 sm:$0xff]  }
 0x5b1   :  { %v6391_v62 = vld [vmem:[%s8713_s15 + $0x120] ss:$28 sps:$4 sm:$0xff]  }
 0x5b2   :  { %v6394_v63 = vld [vmem:[%s8713_s15 + $0x4a0] ss:$28 sps:$4 sm:$0xff]  }
 0x5b3   :  { %4623 = vmatpush2.bf16.msra.mxu0 %v6343_v0  ;;  %4664 = vmatpush2.bf16.msra.mxu1 %v6346_v1  ;;  %v6399_v0 = vld [vmem:[%s8713_s15 + $0xec] ss:$28 sps:$4 sm:$0xff]  }
 0x5b4   :  { %4624 = vmatprep.subr.bf16.mxu0 %v6351_v2  ;;  %4665 = vmatprep.subr.bf16.mxu1 %v6354_v3  ;;  %v6402_v1 = vld [vmem:[%s8713_s15 + $0x46c] ss:$28 sps:$4 sm:$0xff]  }
 0x5b5   :  { %v6397_v2 = vld [vmem:[%s8713_s15 + $0xe8] ss:$28 sps:$4 sm:$0xff]  }
 0x5b6   :  { %v6400_v3 = vld [vmem:[%s8713_s15 + $0x468] ss:$28 sps:$4 sm:$0xff]  }
 0x5b7   :  { %4625 = vmatpush2.bf16.msra.mxu0 %v6349_v4  ;;  %4666 = vmatpush2.bf16.msra.mxu1 %v6352_v5  ;;  %v6405_v4 = vld [vmem:[%s8713_s15 + $0xb4] ss:$28 sps:$4 sm:$0xff]  }
 0x5b8   :  { %4626 = vmatprep.subr.bf16.mxu0 %v6357_v8  ;;  %4667 = vmatprep.subr.bf16.mxu1 %v6360_v9  ;;  %v6408_v5 = vld [vmem:[%s8713_s15 + $0x434] ss:$28 sps:$4 sm:$0xff]  }
 0x5b9   :  { %v6403_v8 = vld [vmem:[%s8713_s15 + $0xb0] ss:$28 sps:$4 sm:$0xff]  }
 0x5ba   :  { %v6406_v9 = vld [vmem:[%s8713_s15 + $0x430] ss:$28 sps:$4 sm:$0xff]  }
 0x5bb   :  { %4627 = vmatpush2.bf16.msra.mxu0 %v6355_v10  ;;  %4668 = vmatpush2.bf16.msra.mxu1 %v6358_v11  ;;  %v6411_v10 = vld [vmem:[%s8713_s15 + $0x7c] ss:$28 sps:$4 sm:$0xff]  }
 0x5bc   :  { %4628 = vmatprep.subr.bf16.mxu0 %v6363_v12  ;;  %4669 = vmatprep.subr.bf16.mxu1 %v6366_v15  ;;  %v6414_v11 = vld [vmem:[%s8713_s15 + $0x3fc] ss:$28 sps:$4 sm:$0xff]  }
 0x5bd   :  { %v6409_v12 = vld [vmem:[%s8713_s15 + $0x78] ss:$28 sps:$4 sm:$0xff]  }
 0x5be   :  { %v6412_v15 = vld [vmem:[%s8713_s15 + $0x3f8] ss:$28 sps:$4 sm:$0xff]  }
 0x5bf   :  { %4629 = vmatpush2.bf16.msra.mxu0 %v6361_v16  ;;  %4670 = vmatpush2.bf16.msra.mxu1 %v6364_v17  ;;  %v6417_v16 = vld [vmem:[%s8713_s15 + $0x44] ss:$28 sps:$4 sm:$0xff]  }
 0x5c0   :  { %4630 = vmatprep.subr.bf16.mxu0 %v6369_v18  ;;  %4671 = vmatprep.subr.bf16.mxu1 %v6372_v19  ;;  %v6420_v17 = vld [vmem:[%s8713_s15 + $0x3c4] ss:$28 sps:$4 sm:$0xff]  }
 0x5c1   :  { %v6415_v18 = vld [vmem:[%s8713_s15 + $0x40] ss:$28 sps:$4 sm:$0xff]  }
 0x5c2   :  { %v6418_v19 = vld [vmem:[%s8713_s15 + $0x3c0] ss:$28 sps:$4 sm:$0xff]  }
 0x5c3   :  { %4631 = vmatpush2.bf16.msra.mxu0 %v6367_v20  ;;  %4672 = vmatpush2.bf16.msra.mxu1 %v6370_v21  ;;  %v6423_v20 = vld [vmem:[%s8713_s15 + $0xc] ss:$28 sps:$4 sm:$0xff]  }
 0x5c4   :  { %4632 = vmatprep.subr.bf16.mxu0 %v6375_v22  ;;  %4673 = vmatprep.subr.bf16.mxu1 %v6378_v23  ;;  %v6426_v21 = vld [vmem:[%s8713_s15 + $0x38c] ss:$28 sps:$4 sm:$0xff]  }
 0x5c5   :  { %v6421_v22 = vld [vmem:[%s8713_s15 + $0x8] ss:$28 sps:$4 sm:$0xff]  }
 0x5c6   :  { %v6424_v23 = vld [vmem:[%s8713_s15 + $0x388] ss:$28 sps:$4 sm:$0xff]  }
 0x5c7   :  { %4633 = vmatpush2.bf16.msra.mxu0 %v6373_v24  ;;  %4674 = vmatpush2.bf16.msra.mxu1 %v6376_v7  ;;  %v6429_v24 = vld [vmem:[%s8713_s15 + $0x354] ss:$28 sps:$4 sm:$0xff]  }
 0x5c8   :  { %4684 = vmatprep.subr.bf16.mxu0 %v6381_v25  ;;  %4725 = vmatprep.subr.bf16.mxu1 %v6384_v26  ;;  %v6432_v7 = vld [vmem:[%s8713_s15 + $0x6d4] ss:$28 sps:$4 sm:$0xff]  }
 0x5c9   :  { %v6427_v25 = vld [vmem:[%s8713_s15 + $0x350] ss:$28 sps:$4 sm:$0xff]  }
 0x5ca   :  { %v6430_v26 = vld [vmem:[%s8713_s15 + $0x6d0] ss:$28 sps:$4 sm:$0xff]  }
 0x64a   :  { %v3101_v30 = vpop.f32.mrf.mxu0  ;;  %v3142_v13 = vpop.f32.mrf.mxu1 }
 0x64b   :  { %v3102_v6 = vadd.f32 %v3101_v30, %v2730_v14  ;;  %v3143_v31 = vadd.f32 %v3142_v13, %v2738_v51  ;;  %v6438_v14 = vld [vmem:[%s8713_s15 + $0x69c] ss:$28 sps:$4 sm:$0xff]   ;;  %v6444_v30 = vld [vmem:[%s8713_s15 + $0x664] ss:$28 sps:$4 sm:$0xff]  }
 0x64c   :  { %v3103_v32 = vpop.f32.mrf.mxu0  ;;  %v3144_v35 = vpop.f32.mrf.mxu1  ;;  %v6433_v51 = vld [vmem:[%s8713_s15 + $0x318] ss:$28 sps:$4 sm:$0xff]   ;;  %v6439_v13 = vld [vmem:[%s8713_s15 + $0x2e0] ss:$28 sps:$4 sm:$0xff]  }
 0x64d   :  { %v3104_v37 = vadd.f32 %v3103_v32, %v2734_v28  ;;  %v3145_v38 = vadd.f32 %v3144_v35, %v2742_v29  ;;  %v3149_v39 = vmax.f32 %v3102_v6, 0.0  ;;  %v3151_v40 = vmax.f32 %v3143_v31, 0.0  ;;  %v6436_v28 = vld [vmem:[%s8713_s15 + $0x698] ss:$28 sps:$4 sm:$0xff]   ;;  %v6441_v29 = vld [vmem:[%s8713_s15 + $0x2e4] ss:$28 sps:$4 sm:$0xff]  }
 0x64e   :  { %v3105_v41 = vpop.f32.mrf.mxu0  ;;  %v3146_v42 = vpop.f32.mrf.mxu1  ;;  %v6442_v6 = vld [vmem:[%s8713_s15 + $0x660] ss:$28 sps:$4 sm:$0xff]   ;;  %v6447_v31 = vld [vmem:[%s8713_s15 + $0x2ac] ss:$28 sps:$4 sm:$0xff]  }
 0x64f   :  { %v3150_v43 = vmax.f32 %v3104_v37, 0.0  ;;  %v3152_v44 = vmax.f32 %v3145_v38, 0.0  ;;  %v8187_v52 = vpack.c.bf16 %v3149_v39, %v3149_v39  ;;  %v8189_v53 = vpack.c.bf16 %v3151_v40, %v3151_v40  ;;  %v6450_v32 = vld [vmem:[%s8713_s15 + $0x62c] ss:$28 sps:$4 sm:$0xff]   ;;  %v6453_v38 = vld [vmem:[%s8713_s15 + $0x274] ss:$28 sps:$4 sm:$0xff]  }
 0x650   :  { %v3106_v45 = vpop.f32.mrf.mxu0  ;;  %v3147_v46 = vpop.f32.mrf.mxu1  ;;  %v6445_v35 = vld [vmem:[%s8713_s15 + $0x2a8] ss:$28 sps:$4 sm:$0xff]   ;;  %v6456_v39 = vld [vmem:[%s8713_s15 + $0x5f4] ss:$28 sps:$4 sm:$0xff]   ;;  %v6459_v42 = vld [vmem:[%s8713_s15 + $0x23c] ss:$28 sps:$4 sm:$0xff]  }
 0x651   :  { %v8177_v47 = vpack.c.bf16 %v3150_v43, %v3150_v43  ;;  %v8179_v48 = vpack.c.bf16 %v3152_v44, %v3152_v44  ;;  %v6448_v37 = vld [vmem:[%s8713_s15 + $0x628] ss:$28 sps:$4 sm:$0xff]   ;;  %v6451_v40 = vld [vmem:[%s8713_s15 + $0x270] ss:$28 sps:$4 sm:$0xff]   ;;  %v6462_v43 = vld [vmem:[%s8713_s15 + $0x5bc] ss:$28 sps:$4 sm:$0xff]  }
 0x652   :  { %v6454_v41 = vld [vmem:[%s8713_s15 + $0x5f0] ss:$28 sps:$4 sm:$0xff]   ;;  %v6457_v44 = vld [vmem:[%s8713_s15 + $0x238] ss:$28 sps:$4 sm:$0xff]   ;;  %v6465_v46 = vld [vmem:[%s8713_s15 + $0x204] ss:$28 sps:$4 sm:$0xff]  }
 0x653   :  { %4634 = vmatprep.mubr.bf16.mxu0 %v8177_v47  ;;  %4675 = vmatprep.mubr.bf16.mxu1 %v8179_v48  ;;  %v6460_v45 = vld [vmem:[%s8713_s15 + $0x5b8] ss:$28 sps:$4 sm:$0xff]  }
 0x654   :  { %4635 = vmatmul.mubr.bf16.vlgmr.msra.gmra.mxu0 %v8187_v52  ;;  %4676 = vmatmul.mubr.bf16.vlgmr.msra.gmra.mxu1 %v8189_v53 }
 0x655   :  { %4685 = vmatpush1.bf16.msra.mxu0 %v6379_v49  ;;  %4726 = vmatpush1.bf16.msra.mxu1 %v6382_v50  ;;  %v6468_v49 = vld [vmem:[%s8713_s15 + $0x584] ss:$28 sps:$4 sm:$0xff]  }
 0x656   :  { %4716 = vmatprep.mubr.bf16.mxu0 %v8177_v47  ;;  %4757 = vmatprep.mubr.bf16.mxu1 %v8179_v48  ;;  %v6463_v50 = vld [vmem:[%s8713_s15 + $0x200] ss:$28 sps:$4 sm:$0xff]  }
 0x657   :  { %4686 = vmatprep.subr.bf16.mxu0 %v6387_v54  ;;  %4727 = vmatprep.subr.bf16.mxu1 %v6390_v55  ;;  %v6466_v54 = vld [vmem:[%s8713_s15 + $0x580] ss:$28 sps:$4 sm:$0xff]   ;;  %v6471_v55 = vld [vmem:[%s8713_s15 + $0x1cc] ss:$28 sps:$4 sm:$0xff]  }
 0x659   :  { %4687 = vmatpush1.bf16.msra.mxu0 %v6385_v56  ;;  %4728 = vmatpush1.bf16.msra.mxu1 %v6388_v57  ;;  %v6474_v56 = vld [vmem:[%s8713_s15 + $0x54c] ss:$28 sps:$4 sm:$0xff]  }
 0x65a   :  { %4688 = vmatprep.subr.bf16.mxu0 %v6393_v58  ;;  %4729 = vmatprep.subr.bf16.mxu1 %v6396_v59  ;;  %v6469_v57 = vld [vmem:[%s8713_s15 + $0x1c8] ss:$28 sps:$4 sm:$0xff]   ;;  %v6477_v59 = vld [vmem:[%s8713_s15 + $0x19c] ss:$28 sps:$4 sm:$0xff]  }
 0x65b   :  { %v6472_v58 = vld [vmem:[%s8713_s15 + $0x548] ss:$28 sps:$4 sm:$0xff]  }
 0x65d   :  { %4689 = vmatpush1.bf16.msra.mxu0 %v6391_v62  ;;  %4730 = vmatpush1.bf16.msra.mxu1 %v6394_v63  ;;  %v6480_v62 = vld [vmem:[%s8713_s15 + $0x51c] ss:$28 sps:$4 sm:$0xff]  }
 0x65e   :  { %4690 = vmatprep.subr.bf16.mxu0 %v6399_v0  ;;  %4731 = vmatprep.subr.bf16.mxu1 %v6402_v1  ;;  %v6475_v63 = vld [vmem:[%s8713_s15 + $0x198] ss:$28 sps:$4 sm:$0xff]   ;;  %v6483_v1 = vld [vmem:[%s8713_s15 + $0x164] ss:$28 sps:$4 sm:$0xff]  }
 0x65f   :  { %v6478_v0 = vld [vmem:[%s8713_s15 + $0x518] ss:$28 sps:$4 sm:$0xff]  }
 0x661   :  { %4691 = vmatpush1.bf16.msra.mxu0 %v6397_v2  ;;  %4732 = vmatpush1.bf16.msra.mxu1 %v6400_v3  ;;  %v6486_v2 = vld [vmem:[%s8713_s15 + $0x4e4] ss:$28 sps:$4 sm:$0xff]  }
 0x662   :  { %4692 = vmatprep.subr.bf16.mxu0 %v6405_v4  ;;  %4733 = vmatprep.subr.bf16.mxu1 %v6408_v5  ;;  %v6481_v3 = vld [vmem:[%s8713_s15 + $0x160] ss:$28 sps:$4 sm:$0xff]   ;;  %v6489_v5 = vld [vmem:[%s8713_s15 + $0x12c] ss:$28 sps:$4 sm:$0xff]  }
 0x663   :  { %v6484_v4 = vld [vmem:[%s8713_s15 + $0x4e0] ss:$28 sps:$4 sm:$0xff]  }
 0x665   :  { %4693 = vmatpush1.bf16.msra.mxu0 %v6403_v8  ;;  %4734 = vmatpush1.bf16.msra.mxu1 %v6406_v9  ;;  %v6492_v8 = vld [vmem:[%s8713_s15 + $0x4ac] ss:$28 sps:$4 sm:$0xff]  }
 0x666   :  { %4694 = vmatprep.subr.bf16.mxu0 %v6411_v10  ;;  %4735 = vmatprep.subr.bf16.mxu1 %v6414_v11  ;;  %v6487_v9 = vld [vmem:[%s8713_s15 + $0x128] ss:$28 sps:$4 sm:$0xff]   ;;  %v6495_v11 = vld [vmem:[%s8713_s15 + $0xf4] ss:$28 sps:$4 sm:$0xff]  }
 0x667   :  { %v6490_v10 = vld [vmem:[%s8713_s15 + $0x4a8] ss:$28 sps:$4 sm:$0xff]  }
 0x669   :  { %4695 = vmatpush1.bf16.msra.mxu0 %v6409_v12  ;;  %4736 = vmatpush1.bf16.msra.mxu1 %v6412_v15  ;;  %v6498_v12 = vld [vmem:[%s8713_s15 + $0x474] ss:$28 sps:$4 sm:$0xff]  }
 0x66a   :  { %4696 = vmatprep.subr.bf16.mxu0 %v6417_v16  ;;  %4737 = vmatprep.subr.bf16.mxu1 %v6420_v17  ;;  %v6493_v15 = vld [vmem:[%s8713_s15 + $0xf0] ss:$28 sps:$4 sm:$0xff]   ;;  %v6501_v17 = vld [vmem:[%s8713_s15 + $0xbc] ss:$28 sps:$4 sm:$0xff]  }
 0x66b   :  { %v6496_v16 = vld [vmem:[%s8713_s15 + $0x470] ss:$28 sps:$4 sm:$0xff]  }
 0x66d   :  { %4697 = vmatpush1.bf16.msra.mxu0 %v6415_v18  ;;  %4738 = vmatpush1.bf16.msra.mxu1 %v6418_v19  ;;  %v6504_v18 = vld [vmem:[%s8713_s15 + $0x43c] ss:$28 sps:$4 sm:$0xff]  }
 0x66e   :  { %4698 = vmatprep.subr.bf16.mxu0 %v6423_v20  ;;  %4739 = vmatprep.subr.bf16.mxu1 %v6426_v21  ;;  %v6499_v19 = vld [vmem:[%s8713_s15 + $0xb8] ss:$28 sps:$4 sm:$0xff]   ;;  %v6507_v21 = vld [vmem:[%s8713_s15 + $0x84] ss:$28 sps:$4 sm:$0xff]  }
 0x66f   :  { %v6502_v20 = vld [vmem:[%s8713_s15 + $0x438] ss:$28 sps:$4 sm:$0xff]  }
 0x671   :  { %4699 = vmatpush1.bf16.msra.mxu0 %v6421_v22  ;;  %4740 = vmatpush1.bf16.msra.mxu1 %v6424_v23  ;;  %v6510_v22 = vld [vmem:[%s8713_s15 + $0x404] ss:$28 sps:$4 sm:$0xff]  }
 0x672   :  { %4700 = vmatprep.subr.bf16.mxu0 %v6429_v24  ;;  %4741 = vmatprep.subr.bf16.mxu1 %v6432_v7  ;;  %v6505_v23 = vld [vmem:[%s8713_s15 + $0x80] ss:$28 sps:$4 sm:$0xff]   ;;  %v6513_v7 = vld [vmem:[%s8713_s15 + $0x4c] ss:$28 sps:$4 sm:$0xff]  }
 0x673   :  { %v6508_v24 = vld [vmem:[%s8713_s15 + $0x400] ss:$28 sps:$4 sm:$0xff]  }
 0x675   :  { %4701 = vmatpush2.bf16.msra.mxu0 %v6427_v25  ;;  %4742 = vmatpush2.bf16.msra.mxu1 %v6430_v26  ;;  %v6516_v25 = vld [vmem:[%s8713_s15 + $0x3cc] ss:$28 sps:$4 sm:$0xff]  }
 0x676   :  { %4702 = vmatprep.subr.bf16.mxu0 %v6435_v27  ;;  %4743 = vmatprep.subr.bf16.mxu1 %v6438_v14  ;;  %v6511_v26 = vld [vmem:[%s8713_s15 + $0x48] ss:$28 sps:$4 sm:$0xff]   ;;  %v6519_v14 = vld [vmem:[%s8713_s15 + $0x14] ss:$28 sps:$4 sm:$0xff]  }
 0x677   :  { %v6514_v27 = vld [vmem:[%s8713_s15 + $0x3c8] ss:$28 sps:$4 sm:$0xff]  }
 0x679   :  { %4703 = vmatpush2.bf16.msra.mxu0 %v6433_v51  ;;  %4744 = vmatpush2.bf16.msra.mxu1 %v6436_v28  ;;  %v6522_v51 = vld [vmem:[%s8713_s15 + $0x394] ss:$28 sps:$4 sm:$0xff]  }
 0x67a   :  { %4704 = vmatprep.subr.bf16.mxu0 %v6441_v29  ;;  %4745 = vmatprep.subr.bf16.mxu1 %v6444_v30  ;;  %v6517_v28 = vld [vmem:[%s8713_s15 + $0x10] ss:$28 sps:$4 sm:$0xff]   ;;  %v6525_v30 = vld [vmem:[%s8713_s15 + $0x35c] ss:$28 sps:$4 sm:$0xff]  }
 0x67b   :  { %v6520_v29 = vld [vmem:[%s8713_s15 + $0x390] ss:$28 sps:$4 sm:$0xff]  }
 0x67d   :  { %4705 = vmatpush2.bf16.msra.mxu0 %v6439_v13  ;;  %4746 = vmatpush2.bf16.msra.mxu1 %v6442_v6  ;;  %v6528_v13 = vld [vmem:[%s8713_s15 + $0x6dc] ss:$28 sps:$4 sm:$0xff]  }
 0x67e   :  { %4706 = vmatprep.subr.bf16.mxu0 %v6447_v31  ;;  %4747 = vmatprep.subr.bf16.mxu1 %v6450_v32  ;;  %v6523_v6 = vld [vmem:[%s8713_s15 + $0x358] ss:$28 sps:$4 sm:$0xff]   ;;  %v6531_v32 = vld [vmem:[%s8713_s15 + $0x324] ss:$28 sps:$4 sm:$0xff]  }
 0x67f   :  { %v6526_v31 = vld [vmem:[%s8713_s15 + $0x6d8] ss:$28 sps:$4 sm:$0xff]  }
 0x681   :  { %4707 = vmatpush2.bf16.msra.mxu0 %v6445_v35  ;;  %4748 = vmatpush2.bf16.msra.mxu1 %v6448_v37  ;;  %v6534_v35 = vld [vmem:[%s8713_s15 + $0x6a4] ss:$28 sps:$4 sm:$0xff]  }
 0x682   :  { %4708 = vmatprep.subr.bf16.mxu0 %v6453_v38  ;;  %4749 = vmatprep.subr.bf16.mxu1 %v6456_v39  ;;  %v6529_v37 = vld [vmem:[%s8713_s15 + $0x320] ss:$28 sps:$4 sm:$0xff]   ;;  %v6537_v39 = vld [vmem:[%s8713_s15 + $0x2ec] ss:$28 sps:$4 sm:$0xff]  }
 0x683   :  { %v6532_v38 = vld [vmem:[%s8713_s15 + $0x6a0] ss:$28 sps:$4 sm:$0xff]  }
 0x685   :  { %4709 = vmatpush2.bf16.msra.mxu0 %v6451_v40  ;;  %4750 = vmatpush2.bf16.msra.mxu1 %v6454_v41  ;;  %v6540_v40 = vld [vmem:[%s8713_s15 + $0x66c] ss:$28 sps:$4 sm:$0xff]  }
 0x686   :  { %4710 = vmatprep.subr.bf16.mxu0 %v6459_v42  ;;  %4751 = vmatprep.subr.bf16.mxu1 %v6462_v43  ;;  %v6535_v41 = vld [vmem:[%s8713_s15 + $0x2e8] ss:$28 sps:$4 sm:$0xff]   ;;  %v6543_v43 = vld [vmem:[%s8713_s15 + $0x2b4] ss:$28 sps:$4 sm:$0xff]  }
 0x687   :  { %v6538_v42 = vld [vmem:[%s8713_s15 + $0x668] ss:$28 sps:$4 sm:$0xff]  }
 0x689   :  { %4711 = vmatpush2.bf16.msra.mxu0 %v6457_v44  ;;  %4752 = vmatpush2.bf16.msra.mxu1 %v6460_v45  ;;  %v6546_v44 = vld [vmem:[%s8713_s15 + $0x634] ss:$28 sps:$4 sm:$0xff]  }
 0x68a   :  { %4712 = vmatprep.subr.bf16.mxu0 %v6465_v46  ;;  %4753 = vmatprep.subr.bf16.mxu1 %v6468_v49  ;;  %v6541_v45 = vld [vmem:[%s8713_s15 + $0x2b0] ss:$28 sps:$4 sm:$0xff]   ;;  %v6549_v49 = vld [vmem:[%s8713_s15 + $0x27c] ss:$28 sps:$4 sm:$0xff]  }
 0x68b   :  { %v6544_v46 = vld [vmem:[%s8713_s15 + $0x630] ss:$28 sps:$4 sm:$0xff]  }
 0x68d   :  { %4713 = vmatpush2.bf16.msra.mxu0 %v6463_v50  ;;  %4754 = vmatpush2.bf16.msra.mxu1 %v6466_v54  ;;  %v6552_v50 = vld [vmem:[%s8713_s15 + $0x5fc] ss:$28 sps:$4 sm:$0xff]  }
 0x68e   :  { %4714 = vmatprep.subr.bf16.mxu0 %v6471_v55  ;;  %4755 = vmatprep.subr.bf16.mxu1 %v6474_v56  ;;  %v6547_v54 = vld [vmem:[%s8713_s15 + $0x278] ss:$28 sps:$4 sm:$0xff]   ;;  %v6555_v56 = vld [vmem:[%s8713_s15 + $0x244] ss:$28 sps:$4 sm:$0xff]  }
 0x68f   :  { %v6550_v55 = vld [vmem:[%s8713_s15 + $0x5f8] ss:$28 sps:$4 sm:$0xff]  }
 0x691   :  { %4715 = vmatpush2.bf16.msra.mxu0 %v6469_v57  ;;  %4756 = vmatpush2.bf16.msra.mxu1 %v6472_v58  ;;  %v6558_v57 = vld [vmem:[%s8713_s15 + $0x5c4] ss:$28 sps:$4 sm:$0xff]  }
 0x692   :  { %4766 = vmatprep.subr.bf16.mxu0 %v6477_v59  ;;  %4807 = vmatprep.subr.bf16.mxu1 %v6480_v62  ;;  %v6553_v58 = vld [vmem:[%s8713_s15 + $0x240] ss:$28 sps:$4 sm:$0xff]   ;;  %v6561_v62 = vld [vmem:[%s8713_s15 + $0x20c] ss:$28 sps:$4 sm:$0xff]  }
 0x693   :  { %v6556_v59 = vld [vmem:[%s8713_s15 + $0x5c0] ss:$28 sps:$4 sm:$0xff]  }
 0x694   :  { %4717 = vmatmul.mubr.bf16.vlgmr.msra.gmra.mxu0 %v8187_v52  ;;  %4758 = vmatmul.mubr.bf16.vlgmr.msra.gmra.mxu1 %v8189_v53 }
 0x695   :  { %4767 = vmatpush1.bf16.msra.mxu0 %v6475_v63  ;;  %4798 = vmatprep.mubr.bf16.mxu0 %v8177_v47  ;;  %v6564_v63 = vld [vmem:[%s8713_s15 + $0x58c] ss:$28 sps:$4 sm:$0xff]  }
 0x696   :  { %4808 = vmatpush1.bf16.msra.mxu1 %v6478_v0  ;;  %4839 = vmatprep.mubr.bf16.mxu1 %v8179_v48  ;;  %v6559_v0 = vld [vmem:[%s8713_s15 + $0x208] ss:$28 sps:$4 sm:$0xff]  }
 0x697   :  { %4768 = vmatprep.subr.bf16.mxu0 %v6483_v1  ;;  %4809 = vmatprep.subr.bf16.mxu1 %v6486_v2  ;;  %v6562_v1 = vld [vmem:[%s8713_s15 + $0x588] ss:$28 sps:$4 sm:$0xff]   ;;  %v6567_v2 = vld [vmem:[%s8713_s15 + $0x1d4] ss:$28 sps:$4 sm:$0xff]  }
 0x699   :  { %4769 = vmatpush1.bf16.msra.mxu0 %v6481_v3  ;;  %v6570_v3 = vld [vmem:[%s8713_s15 + $0x554] ss:$28 sps:$4 sm:$0xff]  }
 0x69a   :  { %4810 = vmatpush1.bf16.msra.mxu1 %v6484_v4  ;;  %4770 = vmatprep.subr.bf16.mxu0 %v6489_v5  ;;  %v6565_v4 = vld [vmem:[%s8713_s15 + $0x1d0] ss:$28 sps:$4 sm:$0xff]  }
 0x69b   :  { %4811 = vmatprep.subr.bf16.mxu1 %v6492_v8  ;;  %v6568_v5 = vld [vmem:[%s8713_s15 + $0x550] ss:$28 sps:$4 sm:$0xff]   ;;  %v6571_v8 = vld [vmem:[%s8713_s15 + $0x360] ss:$28 sps:$4 sm:$0xff]  }
 0x69d   :  { %4771 = vmatpush1.bf16.msra.mxu0 %v6487_v9  ;;  %v6572_v9 = vld [vmem:[%s8713_s15 + $0x6e0] ss:$28 sps:$4 sm:$0xff]  }
 0x69e   :  { %4812 = vmatpush1.bf16.msra.mxu1 %v6490_v10  ;;  %4772 = vmatprep.subr.bf16.mxu0 %v6495_v11  ;;  %v6573_v10 = vld [vmem:[%s8713_s15 + $0x1a0] ss:$28 sps:$4 sm:$0xff]  }
 0x69f   :  { %4813 = vmatprep.subr.bf16.mxu1 %v6498_v12  ;;  %v6574_v11 = vld [vmem:[%s8713_s15 + $0x520] ss:$28 sps:$4 sm:$0xff]   ;;  %v6575_v12 = vld [vmem:[%s8713_s15 + $0x328] ss:$28 sps:$4 sm:$0xff]  }
 0x6a1   :  { %4773 = vmatpush1.bf16.msra.mxu0 %v6493_v15  ;;  %v6576_v15 = vld [vmem:[%s8713_s15 + $0x6a8] ss:$28 sps:$4 sm:$0xff]  }
 0x6a2   :  { %4814 = vmatpush1.bf16.msra.mxu1 %v6496_v16  ;;  %4774 = vmatprep.subr.bf16.mxu0 %v6501_v17  ;;  %v6577_v16 = vld [vmem:[%s8713_s15 + $0x168] ss:$28 sps:$4 sm:$0xff]  }
 0x6a3   :  { %4815 = vmatprep.subr.bf16.mxu1 %v6504_v18  ;;  %v6578_v17 = vld [vmem:[%s8713_s15 + $0x4e8] ss:$28 sps:$4 sm:$0xff]   ;;  %v6579_v18 = vld [vmem:[%s8713_s15 + $0x2f0] ss:$28 sps:$4 sm:$0xff]  }
 0x6a5   :  { %4775 = vmatpush1.bf16.msra.mxu0 %v6499_v19  ;;  %v6580_v19 = vld [vmem:[%s8713_s15 + $0x670] ss:$28 sps:$4 sm:$0xff]  }
 0x6a6   :  { %4816 = vmatpush1.bf16.msra.mxu1 %v6502_v20  ;;  %4776 = vmatprep.subr.bf16.mxu0 %v6507_v21  ;;  %v6582_v20 = vld [vmem:[%s8713_s15 + $0x4b0] ss:$28 sps:$4 sm:$0xff]   ;;  %v6584_v21 = vld [vmem:[%s8713_s15 + $0x638] ss:$28 sps:$4 sm:$0xff]  }
 0x6a7   :  { %4817 = vmatprep.subr.bf16.mxu1 %v6510_v22  ;;  %v6585_v22 = vld [vmem:[%s8713_s15 + $0xf8] ss:$28 sps:$4 sm:$0xff]  }
 0x6a9   :  { %4777 = vmatpush1.bf16.msra.mxu0 %v6505_v23  ;;  %v6586_v23 = vld [vmem:[%s8713_s15 + $0x478] ss:$28 sps:$4 sm:$0xff]  }
 0x6aa   :  { %4818 = vmatpush1.bf16.msra.mxu1 %v6508_v24  ;;  %4778 = vmatprep.subr.bf16.mxu0 %v6513_v7  ;;  %v6587_v24 = vld [vmem:[%s8713_s15 + $0x280] ss:$28 sps:$4 sm:$0xff]  }
 0x6ab   :  { %4819 = vmatprep.subr.bf16.mxu1 %v6516_v25  ;;  %v6588_v7 = vld [vmem:[%s8713_s15 + $0x600] ss:$28 sps:$4 sm:$0xff]  }
 0x6ac   :  { %v6589_v25 = vld [vmem:[%s8713_s15 + $0xc0] ss:$28 sps:$4 sm:$0xff]  }
 0x6ad   :  { %4779 = vmatpush1.bf16.msra.mxu0 %v6511_v26  ;;  %v6590_v26 = vld [vmem:[%s8713_s15 + $0x440] ss:$28 sps:$4 sm:$0xff]  }
 0x6ae   :  { %4820 = vmatpush1.bf16.msra.mxu1 %v6514_v27  ;;  %4780 = vmatprep.subr.bf16.mxu0 %v6519_v14  ;;  %v6591_v27 = vld [vmem:[%s8713_s15 + $0x248] ss:$28 sps:$4 sm:$0xff]  }
 0x6af   :  { %4821 = vmatprep.subr.bf16.mxu1 %v6522_v51  ;;  %v6592_v14 = vld [vmem:[%s8713_s15 + $0x5c8] ss:$28 sps:$4 sm:$0xff]  }
 0x6b0   :  { %v6593_v51 = vld [vmem:[%s8713_s15 + $0x88] ss:$28 sps:$4 sm:$0xff]  }
 0x6b1   :  { %4781 = vmatpush1.bf16.msra.mxu0 %v6517_v28  ;;  %v6594_v28 = vld [vmem:[%s8713_s15 + $0x408] ss:$28 sps:$4 sm:$0xff]  }
 0x6b2   :  { %4822 = vmatpush1.bf16.msra.mxu1 %v6520_v29  ;;  %4782 = vmatprep.subr.bf16.mxu0 %v6525_v30  ;;  %v6595_v29 = vld [vmem:[%s8713_s15 + $0x210] ss:$28 sps:$4 sm:$0xff]  }
 0x6b3   :  { %4823 = vmatprep.subr.bf16.mxu1 %v6528_v13  ;;  %v6596_v30 = vld [vmem:[%s8713_s15 + $0x590] ss:$28 sps:$4 sm:$0xff]  }
 0x6b4   :  { %v6597_v13 = vld [vmem:[%s8713_s15 + $0x50] ss:$28 sps:$4 sm:$0xff]  }
 0x6b5   :  { %4783 = vmatpush2.bf16.msra.mxu0 %v6523_v6  ;;  %v6598_v6 = vld [vmem:[%s8713_s15 + $0x3d0] ss:$28 sps:$4 sm:$0xff]  }
 0x6b6   :  { %4824 = vmatpush2.bf16.msra.mxu1 %v6526_v31  ;;  %4784 = vmatprep.subr.bf16.mxu0 %v6531_v32  ;;  %v6599_v31 = vld [vmem:[%s8713_s15 + $0x1d8] ss:$28 sps:$4 sm:$0xff]  }
 0x6b7   :  { %4825 = vmatprep.subr.bf16.mxu1 %v6534_v35  ;;  %v6600_v32 = vld [vmem:[%s8713_s15 + $0x558] ss:$28 sps:$4 sm:$0xff]  }
 0x6b8   :  { %v6601_v35 = vld [vmem:[%s8713_s15 + $0x18] ss:$28 sps:$4 sm:$0xff]  }
 0x6b9   :  { %4785 = vmatpush2.bf16.msra.mxu0 %v6529_v37  ;;  %v6602_v37 = vld [vmem:[%s8713_s15 + $0x398] ss:$28 sps:$4 sm:$0xff]  }
 0x6ba   :  { %4826 = vmatpush2.bf16.msra.mxu1 %v6532_v38  ;;  %4786 = vmatprep.subr.bf16.mxu0 %v6537_v39  ;;  %v8678_v38 = vld [vmem:[%s8714_s16] sm:$0x7f] }
 0x6bb   :  { %4827 = vmatprep.subr.bf16.mxu1 %v6540_v40  ;;  %v3418_v39 = vrot.slane %v8678_v38, %v7580_v34  ;;  %v3422_v40 = vrot.slane %v8678_v38, %v7586_v36 }
 0x6bd   :  { %4787 = vmatpush2.bf16.msra.mxu0 %v6535_v41 }
 0x6be   :  { %4828 = vmatpush2.bf16.msra.mxu1 %v6538_v42  ;;  %4788 = vmatprep.subr.bf16.mxu0 %v6543_v43 }
 0x6bf   :  { %4829 = vmatprep.subr.bf16.mxu1 %v6546_v44 }
 0x6c1   :  { %4789 = vmatpush2.bf16.msra.mxu0 %v6541_v45 }
 0x6c2   :  { %4830 = vmatpush2.bf16.msra.mxu1 %v6544_v46  ;;  %4790 = vmatprep.subr.bf16.mxu0 %v6549_v49 }
 0x6c3   :  { %4831 = vmatprep.subr.bf16.mxu1 %v6552_v50 }
 0x6c5   :  { %4791 = vmatpush2.bf16.msra.mxu0 %v6547_v54 }
 0x6c6   :  { %4832 = vmatpush2.bf16.msra.mxu1 %v6550_v55  ;;  %4792 = vmatprep.subr.bf16.mxu0 %v6555_v56 }
 0x6c7   :  { %4833 = vmatprep.subr.bf16.mxu1 %v6558_v57 }
 0x6c9   :  { %4793 = vmatpush2.bf16.msra.mxu0 %v6553_v58 }
 0x6ca   :  { %4834 = vmatpush2.bf16.msra.mxu1 %v6556_v59  ;;  %4794 = vmatprep.subr.bf16.mxu0 %v6561_v62 }
 0x6cb   :  { %4835 = vmatprep.subr.bf16.mxu1 %v6564_v63 }
 0x6cd   :  { %4795 = vmatpush2.bf16.msra.mxu0 %v6559_v0  ;;  %v3426_v0 = vrot.slane %v8678_v38, %v7591_v60 }
 0x6ce   :  { %4836 = vmatpush2.bf16.msra.mxu1 %v6562_v1  ;;  %4796 = vmatprep.subr.bf16.mxu0 %v6567_v2  ;;  %v3430_v1 = vrot.slane %v8678_v38, %v7594_v61 }
 0x6cf   :  { %4837 = vmatprep.subr.bf16.mxu1 %v6570_v3 }
 0x6d1   :  { %4797 = vmatpush2.bf16.msra.mxu0 %v6565_v4 }
 0x6d2   :  { %4838 = vmatpush2.bf16.msra.mxu1 %v6568_v5  ;;  %5646 = vmatprep.subr.bf16.mxu0 %v6571_v8 }
 0x6d3   :  { %5668 = vmatprep.subr.bf16.mxu1 %v6572_v9 }
 0x6d4   :  { %4799 = vmatmul.mubr.bf16.vlgmr.msra.gmra.mxu0 %v8187_v52 }
 0x6d5   :  { %4840 = vmatmul.mubr.bf16.vlgmr.msra.gmra.mxu1 %v8189_v53  ;;  %5647 = vmatpush3.bf16.msra.mxu0 %v6573_v10 }
 0x6d6   :  { %4880 = vmatprep.mubr.bf16.mxu0 %v8177_v47  ;;  %5669 = vmatpush3.bf16.msra.mxu1 %v6574_v11  ;;  %v6581_v47 = vld [vmem:[%s8713_s15 + $0x130] ss:$28 sps:$4 sm:$0xff]  }
 0x6d7   :  { %4920 = vmatprep.mubr.bf16.mxu1 %v8179_v48  ;;  %5648 = vmatprep.subr.bf16.mxu0 %v6575_v12  ;;  %v6583_v48 = vld [vmem:[%s8713_s15 + $0x2b8] ss:$28 sps:$4 sm:$0xff]   ;;  %s6657_s15 = smov [#allocation2]  }
 0x6d8   :  { %5670 = vmatprep.subr.bf16.mxu1 %v6576_v15  ;;  %s4983_s16 = sshll.u32 %s6657_s15, 4  ;;  %s4984_s16 = int_to_ptr.vmem [resolvable:$true] %s4983_s16 }
 0x6d9   :  { %5649 = vmatpush3.bf16.msra.mxu0 %v6577_v16  ;;  %s6632_s12 = scalar_lea.vmem %s4984_s16, 896  ;;  %p6637_p1 = scmp.lt.s32.totalorder %s4984_s16, %s4984_s16 }
 0x6da   :  { %5671 = vmatpush3.bf16.msra.mxu1 %v6578_v17  ;;  %5650 = vmatprep.subr.bf16.mxu0 %v6579_v18  ;;  %p6633_p0 = scmp.ne.s32.totalorder %s4984_s16, %s6632_s12  ;;  %p6638_p2 = scmp.lt.s32.totalorder %s6632_s12, %s6632_s12 }
 0x6db   :  { %5672 = vmatprep.subr.bf16.mxu1 %v6580_v19 }
 0x6dc   :  { %p6639_p3 = por %p6638_p2, %p6637_p1 }
 0x6dd   :  { %5651 = vmatpush3.bf16.msra.mxu0 %v6581_v47 }
 0x6de   :  { %5673 = vmatpush3.bf16.msra.mxu1 %v6582_v20  ;;  %5652 = vmatprep.subr.bf16.mxu0 %v6583_v48  ;;  %p6640_p4 = pnand %p6639_p3, %p6633_p0 }
 0x6df   :  { %5674 = vmatprep.subr.bf16.mxu1 %v6584_v21 }
 0x6e1   :  { %5653 = vmatpush3.bf16.msra.mxu0 %v6585_v22  ;;  %v3433_v22 = vsub.s32 4, %v7577_v33 }
 0x6e2   :  { %5675 = vmatpush3.bf16.msra.mxu1 %v6586_v23  ;;  %5654 = vmatprep.subr.bf16.mxu0 %v6587_v24  ;;  %v3437_v23 = vsub.s32 5, %v7577_v33 }
 0x6e3   :  { %5676 = vmatprep.subr.bf16.mxu1 %v6588_v7  ;;  %v3434_v24 = vrot.slane %v8678_v38, %v3433_v22 }
 0x6e4   :  { %v3438_v7 = vrot.slane %v8678_v38, %v3437_v23 }
 0x6e5   :  { %5655 = vmatpush3.bf16.msra.mxu0 %v6589_v25 }
 0x6e6   :  { %5677 = vmatpush3.bf16.msra.mxu1 %v6590_v26  ;;  %5656 = vmatprep.subr.bf16.mxu0 %v6591_v27 }
 0x6e7   :  { %5678 = vmatprep.subr.bf16.mxu1 %v6592_v14 }
 0x6e9   :  { %5657 = vmatpush3.bf16.msra.mxu0 %v6593_v51 }
 0x6ea   :  { %5679 = vmatpush3.bf16.msra.mxu1 %v6594_v28  ;;  %5658 = vmatprep.subr.bf16.mxu0 %v6595_v29 }
 0x6eb   :  { %5680 = vmatprep.subr.bf16.mxu1 %v6596_v30 }
 0x6ed   :  { %5659 = vmatpush3.bf16.msra.mxu0 %v6597_v13 }
 0x6ee   :  { %5681 = vmatpush3.bf16.msra.mxu1 %v6598_v6  ;;  %5660 = vmatprep.subr.bf16.mxu0 %v6599_v31 }
 0x6ef   :  { %5682 = vmatprep.subr.bf16.mxu1 %v6600_v32 }
 0x6f1   :  { %5661 = vmatpush3.bf16.msra.mxu0 %v6601_v35 }
 0x6f2   :  { %5683 = vmatpush3.bf16.msra.mxu1 %v6602_v37 }
 0x6f4   :  { %4881 = vmatmul.mubr.bf16.vlgmr.msra.gmra.mxu0 %v8187_v52 }
 0x6f5   :  { %4921 = vmatmul.mubr.bf16.vlgmr.msra.gmra.mxu1 %v8189_v53 }
 0x714   :  { %v4636_v41 = vpop.f32.mrf.mxu0  ;;  %v4677_v42 = vpop.f32.mrf.mxu1 }
 0x715   :  { %v4637_v43 = vadd.f32 %v4636_v41, %v3418_v39 }
 0x716   :  { %v4638_v44 = vpop.f32.mrf.mxu0  ;;  %v4679_v45 = vpop.f32.mrf.mxu1 }
 0x717   :  { %v4678_v46 = vadd.f32 %v4677_v42, %v4637_v43  ;;  %v4639_v52 = vadd.f32 %v4638_v44, %v3422_v40  ;;  %v3441_v43 = vsub.s32 6, %v7577_v33 }
 0x718   :  { %v4640_v49 = vpop.f32.mrf.mxu0  ;;  %v4681_v53 = vpop.f32.mrf.mxu1 }
 0x719   :  { %v5599_v50 = vmul.f32 -1.442695, %v4678_v46  ;;  %v4680_v54 = vadd.f32 %v4679_v45, %v4639_v52  ;;  %v3442_v46 = vrot.slane %v8678_v38, %v3441_v43 }
 0x71a   :  { %v4641_v55 = vpop.f32.mrf.mxu0  ;;  %v4682_v56 = vpop.f32.mrf.mxu1 }
 0x71b   :  { %6603 = vpow2.f32 %v5599_v50  ;;  %v5600_v57 = vmul.f32 -1.442695, %v4680_v54 }
 0x71d   :  { %6605 = vpow2.f32 %v5600_v57 }
 0x728   :  { %v6604_v34 = vpop.eup %6603 }
 0x729   :  { %v4949_v58 = vadd.f32 1.0, %v6604_v34 }
 0x72a   :  { %v6606_v59 = vpop.eup %6605 }
 0x72b   :  { %6607 = vrcp.f32 %v4949_v58  ;;  %v4950_v36 = vadd.f32 1.0, %v6606_v59 }
 0x72d   :  { %6609 = vrcp.f32 %v4950_v36 }
 0x738   :  { %v6608_v62 = vpop.eup %6607 }
 0x739   :  { %4970 = vst [vmem:[#allocation2] sm:$0xff] %v6608_v62 }
 0x73a   :  { %v6610_v63 = vpop.eup %6609 }
 0x73b   :  { %4971 = vst [vmem:[#allocation2 + $0x8] sm:$0xff] %v6610_v63 }
 0x754   :  { %v4718_v2 = vpop.f32.mrf.mxu0  ;;  %v4759_v3 = vpop.f32.mrf.mxu1 }
 0x755   :  { %v4719_v4 = vadd.f32 %v4718_v2, %v3426_v0 }
 0x756   :  { %v4720_v5 = vpop.f32.mrf.mxu0  ;;  %v4761_v8 = vpop.f32.mrf.mxu1 }
 0x757   :  { %v4760_v9 = vadd.f32 %v4759_v3, %v4719_v4  ;;  %v4721_v10 = vadd.f32 %v4720_v5, %v3430_v1 }
 0x758   :  { %v4722_v11 = vpop.f32.mrf.mxu0  ;;  %v4763_v12 = vpop.f32.mrf.mxu1 }
 0x759   :  { %v5601_v15 = vmul.f32 -1.442695, %v4760_v9  ;;  %v4762_v16 = vadd.f32 %v4761_v8, %v4721_v10 }
 0x75a   :  { %v4723_v17 = vpop.f32.mrf.mxu0  ;;  %v4764_v18 = vpop.f32.mrf.mxu1 }
 0x75b   :  { %6611 = vpow2.f32 %v5601_v15  ;;  %v5602_v19 = vmul.f32 -1.442695, %v4762_v16 }
 0x75d   :  { %6613 = vpow2.f32 %v5602_v19 }
 0x768   :  { %v6612_v60 = vpop.eup %6611 }
 0x769   :  { %v4951_v47 = vadd.f32 1.0, %v6612_v60 }
 0x76a   :  { %v6614_v20 = vpop.eup %6613 }
 0x76b   :  { %6615 = vrcp.f32 %v4951_v47  ;;  %v4952_v61 = vadd.f32 1.0, %v6614_v20 }
 0x76d   :  { %6617 = vrcp.f32 %v4952_v61 }
 0x778   :  { %v6616_v48 = vpop.eup %6615 }
 0x779   :  { %4972 = vst [vmem:[#allocation2 + $0x10] sm:$0xff] %v6616_v48 }
 0x77a   :  { %v6618_v21 = vpop.eup %6617 }
 0x77b   :  { %4973 = vst [vmem:[#allocation2 + $0x18] sm:$0xff] %v6618_v21 }
 0x794   :  { %v4800_v25 = vpop.f32.mrf.mxu0 }
 0x795   :  { %v4801_v26 = vadd.f32 %v4800_v25, %v3434_v24  ;;  %v4841_v27 = vpop.f32.mrf.mxu1 }
 0x796   :  { %v4802_v14 = vpop.f32.mrf.mxu0 }
 0x797   :  { %v4842_v51 = vadd.f32 %v4841_v27, %v4801_v26  ;;  %v4803_v28 = vadd.f32 %v4802_v14, %v3438_v7  ;;  %v4843_v29 = vpop.f32.mrf.mxu1 }
 0x798   :  { %v4804_v30 = vpop.f32.mrf.mxu0 }
 0x799   :  { %v5603_v13 = vmul.f32 -1.442695, %v4842_v51  ;;  %v4844_v6 = vadd.f32 %v4843_v29, %v4803_v28  ;;  %v4845_v31 = vpop.f32.mrf.mxu1 }
 0x79a   :  { %v4805_v32 = vpop.f32.mrf.mxu0 }
 0x79b   :  { %6619 = vpow2.f32 %v5603_v13  ;;  %v5604_v35 = vmul.f32 -1.442695, %v4844_v6  ;;  %v4846_v37 = vpop.f32.mrf.mxu1 }
 0x79d   :  { %6621 = vpow2.f32 %v5604_v35 }
 0x7a8   :  { %v6620_v39 = vpop.eup %6619 }
 0x7a9   :  { %v4953_v40 = vadd.f32 1.0, %v6620_v39 }
 0x7aa   :  { %v6622_v41 = vpop.eup %6621 }
 0x7ab   :  { %6623 = vrcp.f32 %v4953_v40  ;;  %v4954_v42 = vadd.f32 1.0, %v6622_v41 }
 0x7ad   :  { %6625 = vrcp.f32 %v4954_v42 }
 0x7b4   :  { %v5662_v44 = vpop.f32.mrf.mxu0 }
 0x7b5   :  { %v5684_v45 = vpop.f32.mrf.mxu1 }
 0x7b6   :  { %v5663_v52 = vpop.f32.mrf.mxu0 }
 0x7b7   :  { %v5664_v49 = vadd.f32 %v5663_v52, %v5662_v44  ;;  %v5685_v53 = vpop.f32.mrf.mxu1 }
 0x7b8   :  { %v6624_v50 = vpop.eup %6623  ;;  %v5665_v54 = vpop.f32.mrf.mxu0  ;;  %v5686_v56 = vadd.f32 %v5685_v53, %v5684_v45 }
 0x7b9   :  { %4974 = vst [vmem:[#allocation2 + $0x20] sm:$0xff] %v6624_v50  ;;  %v4883_v55 = vadd.f32 %v5664_v49, %v3442_v46  ;;  %v5687_v57 = vpop.f32.mrf.mxu1 }
 0x7ba   :  { %v6626_v34 = vpop.eup %6625  ;;  %v5666_v58 = vpop.f32.mrf.mxu0 }
 0x7bb   :  { %4975 = vst [vmem:[#allocation2 + $0x28] sm:$0xff] %v6626_v34  ;;  %v4923_v59 = vadd.f32 %v5686_v56, %v4883_v55  ;;  %v5688_v36 = vpop.f32.mrf.mxu1 }
 0x7bd   :  { %v5605_v62 = vmul.f32 -1.442695, %v4923_v59 }
 0x7bf   :  { %6627 = vpow2.f32 %v5605_v62 }
 0x7cc   :  { %v6628_v33 = vpop.eup %6627 }
 0x7cd   :  { %v4955_v63 = vadd.f32 1.0, %v6628_v33 }
 0x7cf   :  { %6629 = vrcp.f32 %v4955_v63 }
 0x7dc   :  { %v6630_v38 = vpop.eup %6629 }
 0x7dd   :  { %4976 = vst.msk [vmem:[#allocation2 + $0x30] sm:$0xff] %vm1284_vm0, %v6630_v38 }
 0x7de   :  { %6643 = shalt.err (!%p6640_p4)
}
 0x7df   :  { %4986 = dma.vmem_to_hbm [thread:$0]  %s4984_s16, 896, %s8715_s17, [#allocation3]  }
 0x7e0   :  { %6652 = dma.done.wait [#allocation3], 896  }
 0x7e1   :  { %6653 = vsyncadd [#allocation3], 4294966400 }
 0x7e2   :  { %4990 = vsyncpa [#allocation3], 1 }

</bundles_post_ra>
